<compile_context>
chip_gen: v5e
topology: v5e:2x2
jax: 0.10.0
libtpu: 0.0.40
codegen_flags: <defaults>
</compile_context>

<pallas_src>
import functools

import jax
import jax.numpy as jnp
from jax.experimental import pallas as pl
from jax.experimental.pallas import tpu as pltpu


def _vmem():
    return pl.BlockSpec(memory_space=pltpu.MemorySpace.VMEM)


_COMPILER_PARAMS = pltpu.CompilerParams(vmem_limit_bytes=32 * 1024 * 1024)


# ----------------------------------------------------------------------------
# The fused kernel: conv1->relu->bn1 -> conv2->relu->bn2 -> LSTM x2 -> MLP head
# ----------------------------------------------------------------------------

def mpnn_lstm_kernel(a_ref, x_ref, skip_ref,
                     w1_ref, b1_ref, g1_ref, be1_ref,
                     w2_ref, b2_ref, g2_ref, be2_ref,
                     wih1_ref, bl1_ref, whh1_ref,
                     w2s_ref, bl2_ref,
                     wfc1_ref, bfc1_ref, wfc2_ref, bfc2_ref,
                     o_ref,
                     xcat_ref, feat_ref,
                     *, B, window, n_nodes, nhid, nfeat, nout):
    N = B * window * n_nodes
    Bn = B * n_nodes
    T = window
    H = nhid

    a = a_ref[...]                                   # (N, N) bf16 dense D^-1/2(A+I)D^-1/2

    def gcn_relu_bn(x_bf, w_ref, b_ref, g_ref, be_ref):
        # GCNConv: A_norm @ (X @ W) + b  as two dense MXU matmuls.
        xw = jnp.dot(x_bf, w_ref[...], preferred_element_type=jnp.float32)   # (N, H)
        y = jnp.dot(a, xw.astype(jnp.bfloat16), preferred_element_type=jnp.float32)
        y = jnp.maximum(y + b_ref[...], 0.0)                                 # ReLU
        # Single-pass BatchNorm batch statistics: var = E[x^2] - mean^2.
        # TODO(synk): eval-mode running statistics not modeled (train-mode fwd).
        inv_n = 1.0 / N
        mean = jnp.sum(y, axis=0, keepdims=True) * inv_n
        var = jnp.sum(y * y, axis=0, keepdims=True) * inv_n - mean * mean
        return g_ref[...] * (y - mean) * jax.lax.rsqrt(var + 1e-5) + be_ref[...]

    # TODO(synk): nn.Dropout with p>0 (training-mode random masking) not modeled;
    #             p=0 -> identity.
    x1 = gcn_relu_bn(x_ref[...], w1_ref, b1_ref, g1_ref, be1_ref)            # (N, H) f32
    x2 = gcn_relu_bn(x1.astype(jnp.bfloat16), w2_ref, b2_ref, g2_ref, be2_ref)

    # [x1 | x2] assembled through a VMEM scratch (rows are already in seq-major
    # (window, B, n_nodes) order -> no relayout needed).
    xcat_ref[:, 0:H] = x1
    xcat_ref[:, H:2 * H] = x2

    # Layer-1 LSTM input projection hoisted out of the serial recurrence:
    # one (T*Bn, 2H) x (2H, 4H) matmul against the unsplit W_ih1.
    xproj = (jnp.dot(xcat_ref[...].astype(jnp.bfloat16), wih1_ref[...],
                     preferred_element_type=jnp.float32)
             + bl1_ref[...]).reshape(T, Bn, 4 * H)

    whh1 = whh1_ref[...]                              # (H, 4H)  bf16
    w2s = w2s_ref[...]                                # (2H, 4H) bf16, [W_ih2; W_hh2]
    bl2 = bl2_ref[...]                                # (1, 4H)  f32  (hoisted broadcast)

    def cell(g, c):
        # PyTorch gate order i, f, g, o.  Full-width EUP: one sigmoid + one tanh
        # over all 4H gate lanes, then lane slices (instead of 4 padded EUP calls).
        s = jax.nn.sigmoid(g)
        t = jnp.tanh(g)
        i, f, o = s[:, 0:H], s[:, H:2 * H], s[:, 3 * H:4 * H]
        gg = t[:, 2 * H:3 * H]
        c_new = f * c + i * gg
        return o * jnp.tanh(c_new), c_new

    # Skip features are parked once in the tail lanes of feat_ref; the time loop
    # only ever touches feat_ref[:, :2H].
    feat_ref[:, 2 * H:] = skip_ref[...]

    zero = jnp.zeros((Bn, H), jnp.float32)
    h1, c1, h2, c2 = zero, zero, zero, zero
    for t in range(T):                 # window is a small static constant -> unrolled
        g1 = xproj[t] + jnp.dot(h1.astype(jnp.bfloat16), whh1,
                                preferred_element_type=jnp.float32)
        h1, c1 = cell(g1, c1)
        # Layer-2 gates via stacked weight: one K=2H matmul instead of two K=H.
        feat_ref[:, 0:H] = h1
        feat_ref[:, H:2 * H] = h2
        g2 = jnp.dot(feat_ref[:, 0:2 * H].astype(jnp.bfloat16), w2s,
                     preferred_element_type=jnp.float32) + bl2
        h2, c2 = cell(g2, c2)

    # Fused MLP head: fc1 over [hn1 | hn2 | skip] as a single K=(2H+window*nfeat)
    # matmul (skip was laid out (Bn, window*nfeat) outside the kernel).
    feat_ref[:, 0:H] = h1
    feat_ref[:, H:2 * H] = h2
    hfc = jnp.maximum(jnp.dot(feat_ref[...].astype(jnp.bfloat16), wfc1_ref[...],
                              preferred_element_type=jnp.float32)
                      + bfc1_ref[...], 0.0)

    if nout == 1:
        # fc2 as a VPU multiply + lane reduction -> no M=1 MXU launch.
        val = jnp.sum(hfc * wfc2_ref[...], axis=-1, keepdims=True) + bfc2_ref[...]
    else:
        val = jnp.dot(hfc.astype(jnp.bfloat16), wfc2_ref[...],
                      preferred_element_type=jnp.float32) + bfc2_ref[...]
    o_ref[...] = jnp.maximum(val, 0.0)


# ----------------------------------------------------------------------------
# Glue: dense seq-major GCN normalization, parameter prep, forward wrapper
# ----------------------------------------------------------------------------

def build_dense_gcn_adj(edge_index, edge_weight, B, window, n_nodes):
    """Dense D^{-1/2}(A+I)D^{-1/2} (torch_geometric gcn_norm semantics), with node
    indices permuted to seq-major (window, B, n_nodes) order so the GCN output is
    already in the LSTM layout.  Handles arbitrary (even cross-block) edges."""
    N = B * window * n_nodes

    def to_seq_major(idx):
        b = idx // (window * n_nodes)
        rem = idx % (window * n_nodes)
        w = rem // n_nodes
        i = rem % n_nodes
        return w * (B * n_nodes) + b * n_nodes + i

    row = to_seq_major(edge_index[0])
    col = to_seq_major(edge_index[1])
    loop = jnp.arange(N, dtype=row.dtype)
    row = jnp.concatenate([row, loop])
    col = jnp.concatenate([col, loop])
    w = jnp.concatenate([edge_weight, jnp.ones((N,), edge_weight.dtype)])
    deg = jnp.zeros((N,), w.dtype).at[col].add(w)
    dinv = jnp.where(deg > 0, jax.lax.rsqrt(deg), 0.0)
    norm = dinv[row] * w * dinv[col]
    # propagation: out[col] += norm * x[row]  =>  A[col, row] = norm
    return jnp.zeros((N, N), w.dtype).at[col, row].add(norm)


def init_params(key, nfeat, nhid, nout, window):
    def nrm(k, shape, scale=0.1):
        return (scale * jax.random.normal(k, shape)).astype(jnp.float32)

    ks = jax.random.split(key, 16)
    return {
        # GCNConv: weight (in, out) + bias
        "w_conv1": nrm(ks[0], (nfeat, nhid)), "b_conv1": nrm(ks[1], (nhid,)),
        "w_conv2": nrm(ks[2], (nhid, nhid)), "b_conv2": nrm(ks[3], (nhid,)),
        # BatchNorm1d affine params
        "bn1_gamma": jnp.ones((nhid,), jnp.float32), "bn1_beta": jnp.zeros((nhid,), jnp.float32),
        "bn2_gamma": jnp.ones((nhid,), jnp.float32), "bn2_beta": jnp.zeros((nhid,), jnp.float32),
        # LSTM1 (input 2*nhid) / LSTM2 (input nhid); stored transposed,
        # biases combined (b_ih + b_hh).  PyTorch gate order i, f, g, o.
        "wih1_t": nrm(ks[4], (2 * nhid, 4 * nhid)), "whh1_t": nrm(ks[5], (nhid, 4 * nhid)),
        "b1": nrm(ks[6], (4 * nhid,)),
        "wih2_t": nrm(ks[7], (nhid, 4 * nhid)), "whh2_t": nrm(ks[8], (nhid, 4 * nhid)),
        "b2": nrm(ks[9], (4 * nhid,)),
        # fc1 stored transposed (in, out) with rows ordered [hn1, hn2, skip];
        # fc2 stored PyTorch-native (out, in)
        "w_fc1_t": nrm(ks[10], (2 * nhid + window * nfeat, nhid)), "b_fc1": nrm(ks[11], (nhid,)),
        "w_fc2": nrm(ks[12], (nout, nhid)), "b_fc2": nrm(ks[13], (nout,)),
    }


def prepare_params(params, nhid, nout):
    """One-time weight prep (cast to bf16, stack, reshape) outside the hot path."""
    bf = lambda a: a.astype(jnp.bfloat16)
    row = lambda a: a.reshape(1, -1).astype(jnp.float32)
    p = {
        "w1": bf(params["w_conv1"]), "b1": row(params["b_conv1"]),
        "g1": row(params["bn1_gamma"]), "be1": row(params["bn1_beta"]),
        "w2": bf(params["w_conv2"]), "b2": row(params["b_conv2"]),
        "g2": row(params["bn2_gamma"]), "be2": row(params["bn2_beta"]),
        "wih1": bf(params["wih1_t"]), "bl1": row(params["b1"]),
        "whh1": bf(params["whh1_t"]),
        # Stacked layer-2 weight so [h1|h2] @ w2s == h1@W_ih2 + h2@W_hh2
        "w2s": bf(jnp.concatenate([params["wih2_t"], params["whh2_t"]], axis=0)),
        "bl2": row(params["b2"]),
        "wfc1": bf(params["w_fc1_t"]), "bfc1": row(params["b_fc1"]),
        "bfc2": params["b_fc2"].reshape(1, nout).astype(jnp.float32),
    }
    if nout == 1:
        p["wfc2"] = params["w_fc2"].reshape(1, nhid).astype(jnp.float32)   # VPU-reduce path
    else:
        p["wfc2"] = bf(params["w_fc2"].T)                                  # (nhid, nout) MXU path
    return p


@functools.partial(jax.jit,
                   static_argnames=("B", "window", "n_nodes", "nfeat", "nhid", "nout"))
def mpnn_lstm_forward(prepped, edge_index, edge_weight, x,
                      B, window, n_nodes, nfeat, nhid, nout):
    N = B * window * n_nodes
    Bn = B * n_nodes

    x4 = x.reshape(B, window, n_nodes, nfeat)
    # Seq-major node rows (window, B, n_nodes): the GCN result is then already in
    # the LSTM's (window, B*n_nodes, :) layout -> no in-kernel relayout loop.
    x_perm = x4.transpose(1, 0, 2, 3).reshape(N, nfeat).astype(jnp.bfloat16)
    # PyTorch skip path: (B, window, n, F) -> transpose(1,2) -> (Bn, window*F)
    skip = x4.transpose(0, 2, 1, 3).reshape(Bn, window * nfeat)

    A = build_dense_gcn_adj(edge_index, edge_weight, B, window,
                            n_nodes).astype(jnp.bfloat16)

    # TODO(synk): for large N, switch to a row-tiled grid with block-diagonal A, a
    # two-pass (cross-tile) BatchNorm reduction, Bn-tiled LSTM states, and a
    # "parallel" grid axis for v7x's two TensorCores (re-budget tiles for 64 MiB VMEM).
    out2d = pl.pallas_call(
        functools.partial(mpnn_lstm_kernel, B=B, window=window, n_nodes=n_nodes,
                          nhid=nhid, nfeat=nfeat, nout=nout),
        out_shape=jax.ShapeDtypeStruct((Bn, nout), jnp.float32),
        in_specs=[_vmem()] * 20,
        out_specs=_vmem(),
        scratch_shapes=[pltpu.VMEM((N, 2 * nhid), jnp.float32),                     # [x1|x2]
                        pltpu.VMEM((Bn, 2 * nhid + window * nfeat), jnp.float32)],  # [h1|h2|skip]
        compiler_params=_COMPILER_PARAMS,
    )(A, x_perm, skip,
      prepped["w1"], prepped["b1"], prepped["g1"], prepped["be1"],
      prepped["w2"], prepped["b2"], prepped["g2"], prepped["be2"],
      prepped["wih1"], prepped["bl1"], prepped["whh1"],
      prepped["w2s"], prepped["bl2"],
      prepped["wfc1"], prepped["bfc1"],
      prepped["wfc2"], prepped["bfc2"])

    # squeeze + view(-1): row-major flatten of (Bn, nout) matches PyTorch exactly.
    return out2d.reshape(-1)


# ----------------------------------------------------------------------------
# Example run
# ----------------------------------------------------------------------------

if __name__ == "__main__":
    B, window, n_nodes = 2, 4, 8
    nfeat, nhid, nout = 8, 32, 1          # nhid=32 -> 4*nhid = 128 (lane-dense gates)
    N = B * window * n_nodes

    key = jax.random.PRNGKey(0)
    k_par, k_x, k_w = jax.random.split(key, 3)

    params = init_params(k_par, nfeat, nhid, nout, window)
    prepped = prepare_params(params, nhid, nout)

    # Node features: (B*window*n_nodes, nfeat), rows ordered (B, window, n_nodes)
    x = jax.random.normal(k_x, (N, nfeat), dtype=jnp.float32)

    # Block-diagonal ring graph over the B*window sub-graphs (COO indices + weights)
    src, dst = [], []
    for g in range(B * window):
        base = g * n_nodes
        for i in range(n_nodes):
            j = (i + 1) % n_nodes
            src += [base + i, base + j]
            dst += [base + j, base + i]
    edge_index = jnp.array([src, dst], dtype=jnp.int32)          # (2, E)
    edge_weight = jax.random.uniform(k_w, (edge_index.shape[1],),
                                     minval=0.5, maxval=1.5).astype(jnp.float32)

    out = mpnn_lstm_forward(prepped, edge_index, edge_weight, x,
                            B=B, window=window, n_nodes=n_nodes,
                            nfeat=nfeat, nhid=nhid, nout=nout)
    out = jax.block_until_ready(out)
    assert out.shape == (B * n_nodes * nout,)
    assert bool(jnp.all(jnp.isfinite(out)))
    print("KERNEL_OK")
</pallas_src>

<mosaic_0001>
module attributes {stable_mosaic.version = 11 : i64} {
  func.func @mpnn_lstm_kernel(%arg0: memref<64x64xbf16, #tpu.memory_space<vmem>>, %arg1: memref<64x8xbf16, #tpu.memory_space<vmem>>, %arg2: memref<16x32xf32, #tpu.memory_space<vmem>>, %arg3: memref<8x32xbf16, #tpu.memory_space<vmem>>, %arg4: memref<1x32xf32, #tpu.memory_space<vmem>>, %arg5: memref<1x32xf32, #tpu.memory_space<vmem>>, %arg6: memref<1x32xf32, #tpu.memory_space<vmem>>, %arg7: memref<32x32xbf16, #tpu.memory_space<vmem>>, %arg8: memref<1x32xf32, #tpu.memory_space<vmem>>, %arg9: memref<1x32xf32, #tpu.memory_space<vmem>>, %arg10: memref<1x32xf32, #tpu.memory_space<vmem>>, %arg11: memref<64x128xbf16, #tpu.memory_space<vmem>>, %arg12: memref<1x128xf32, #tpu.memory_space<vmem>>, %arg13: memref<32x128xbf16, #tpu.memory_space<vmem>>, %arg14: memref<64x128xbf16, #tpu.memory_space<vmem>>, %arg15: memref<1x128xf32, #tpu.memory_space<vmem>>, %arg16: memref<96x32xbf16, #tpu.memory_space<vmem>>, %arg17: memref<1x32xf32, #tpu.memory_space<vmem>>, %arg18: memref<1x32xf32, #tpu.memory_space<vmem>>, %arg19: memref<1x1xf32, #tpu.memory_space<vmem>>, %arg20: memref<16x1xf32, #tpu.memory_space<vmem>>, %arg21: memref<64x64xf32, #tpu.memory_space<vmem>>, %arg22: memref<16x96xf32, #tpu.memory_space<vmem>>) attributes {dimension_semantics = [], scalar_prefetch = 0 : i64, scratch_operands = 2 : i64, tpu.core_type = #tpu.core_type<tc>} {
    %c0 = arith.constant 0 : index
    %c0_0 = arith.constant 0 : index
    %0 = vector.load %arg0[%c0, %c0_0] : memref<64x64xbf16, #tpu.memory_space<vmem>>, vector<64x64xbf16>
    %c0_1 = arith.constant 0 : index
    %c0_2 = arith.constant 0 : index
    %1 = vector.load %arg1[%c0_1, %c0_2] : memref<64x8xbf16, #tpu.memory_space<vmem>>, vector<64x8xbf16>
    %c0_3 = arith.constant 0 : index
    %c0_4 = arith.constant 0 : index
    %2 = vector.load %arg3[%c0_3, %c0_4] : memref<8x32xbf16, #tpu.memory_space<vmem>>, vector<8x32xbf16>
    %cst = arith.constant dense<0.000000e+00> : vector<64x32xf32>
    %3 = tpu.matmul %1, %2, %cst {dimension_numbers = #tpu.dot_dimension_numbers<[1], [0], [0], [1], [0, 0, 1, 1], [], []>} : vector<64x8xbf16>, vector<8x32xbf16>, vector<64x32xf32> -> vector<64x32xf32>
    %4 = arith.truncf %3 : vector<64x32xf32> to vector<64x32xbf16>
    %cst_5 = arith.constant dense<0.000000e+00> : vector<64x32xf32>
    %5 = tpu.matmul %0, %4, %cst_5 {dimension_numbers = #tpu.dot_dimension_numbers<[1], [0], [0], [1], [0, 0, 1, 1], [], []>} : vector<64x64xbf16>, vector<64x32xbf16>, vector<64x32xf32> -> vector<64x32xf32>
    %c0_6 = arith.constant 0 : index
    %c0_7 = arith.constant 0 : index
    %6 = vector.load %arg4[%c0_6, %c0_7] : memref<1x32xf32, #tpu.memory_space<vmem>>, vector<1x32xf32>
    %7 = vector.broadcast %6 : vector<1x32xf32> to vector<64x32xf32>
    %8 = arith.addf %5, %7 : vector<64x32xf32>
    %cst_8 = arith.constant 0.000000e+00 : f32
    %9 = vector.broadcast %cst_8 : f32 to vector<64x32xf32>
    %10 = arith.maximumf %8, %9 : vector<64x32xf32>
    %cst_9 = arith.constant dense<0.000000e+00> : vector<32xf32>
    %11 = vector.multi_reduction <add>, %10, %cst_9 [0] : vector<64x32xf32> to vector<32xf32>
    %12 = vector.shape_cast %11 : vector<32xf32> to vector<1x32xf32>
    %cst_10 = arith.constant 1.562500e-02 : f32
    %13 = vector.broadcast %cst_10 : f32 to vector<1x32xf32>
    %14 = arith.mulf %12, %13 : vector<1x32xf32>
    %15 = arith.mulf %10, %10 : vector<64x32xf32>
    %cst_11 = arith.constant dense<0.000000e+00> : vector<32xf32>
    %16 = vector.multi_reduction <add>, %15, %cst_11 [0] : vector<64x32xf32> to vector<32xf32>
    %17 = vector.shape_cast %16 : vector<32xf32> to vector<1x32xf32>
    %cst_12 = arith.constant 1.562500e-02 : f32
    %18 = vector.broadcast %cst_12 : f32 to vector<1x32xf32>
    %19 = arith.mulf %17, %18 : vector<1x32xf32>
    %20 = arith.mulf %14, %14 : vector<1x32xf32>
    %21 = arith.subf %19, %20 : vector<1x32xf32>
    %c0_13 = arith.constant 0 : index
    %c0_14 = arith.constant 0 : index
    %22 = vector.load %arg5[%c0_13, %c0_14] : memref<1x32xf32, #tpu.memory_space<vmem>>, vector<1x32xf32>
    %23 = vector.broadcast %14 : vector<1x32xf32> to vector<64x32xf32>
    %24 = arith.subf %10, %23 : vector<64x32xf32>
    %25 = vector.broadcast %22 : vector<1x32xf32> to vector<64x32xf32>
    %26 = arith.mulf %25, %24 : vector<64x32xf32>
    %cst_15 = arith.constant 9.99999974E-6 : f32
    %27 = vector.broadcast %cst_15 : f32 to vector<1x32xf32>
    %28 = arith.addf %21, %27 : vector<1x32xf32>
    %29 = math.rsqrt %28 : vector<1x32xf32>
    %30 = vector.broadcast %29 : vector<1x32xf32> to vector<64x32xf32>
    %31 = arith.mulf %26, %30 : vector<64x32xf32>
    %c0_16 = arith.constant 0 : index
    %c0_17 = arith.constant 0 : index
    %32 = vector.load %arg6[%c0_16, %c0_17] : memref<1x32xf32, #tpu.memory_space<vmem>>, vector<1x32xf32>
    %33 = vector.broadcast %32 : vector<1x32xf32> to vector<64x32xf32>
    %34 = arith.addf %31, %33 : vector<64x32xf32>
    %35 = arith.truncf %34 : vector<64x32xf32> to vector<64x32xbf16>
    %c0_18 = arith.constant 0 : index
    %c0_19 = arith.constant 0 : index
    %36 = vector.load %arg7[%c0_18, %c0_19] : memref<32x32xbf16, #tpu.memory_space<vmem>>, vector<32x32xbf16>
    %cst_20 = arith.constant dense<0.000000e+00> : vector<64x32xf32>
    %37 = tpu.matmul %35, %36, %cst_20 {dimension_numbers = #tpu.dot_dimension_numbers<[1], [0], [0], [1], [0, 0, 1, 1], [], []>} : vector<64x32xbf16>, vector<32x32xbf16>, vector<64x32xf32> -> vector<64x32xf32>
    %38 = arith.truncf %37 : vector<64x32xf32> to vector<64x32xbf16>
    %cst_21 = arith.constant dense<0.000000e+00> : vector<64x32xf32>
    %39 = tpu.matmul %0, %38, %cst_21 {dimension_numbers = #tpu.dot_dimension_numbers<[1], [0], [0], [1], [0, 0, 1, 1], [], []>} : vector<64x64xbf16>, vector<64x32xbf16>, vector<64x32xf32> -> vector<64x32xf32>
    %c0_22 = arith.constant 0 : index
    %c0_23 = arith.constant 0 : index
    %40 = vector.load %arg8[%c0_22, %c0_23] : memref<1x32xf32, #tpu.memory_space<vmem>>, vector<1x32xf32>
    %41 = vector.broadcast %40 : vector<1x32xf32> to vector<64x32xf32>
    %42 = arith.addf %39, %41 : vector<64x32xf32>
    %cst_24 = arith.constant 0.000000e+00 : f32
    %43 = vector.broadcast %cst_24 : f32 to vector<64x32xf32>
    %44 = arith.maximumf %42, %43 : vector<64x32xf32>
    %cst_25 = arith.constant dense<0.000000e+00> : vector<32xf32>
    %45 = vector.multi_reduction <add>, %44, %cst_25 [0] : vector<64x32xf32> to vector<32xf32>
    %46 = vector.shape_cast %45 : vector<32xf32> to vector<1x32xf32>
    %cst_26 = arith.constant 1.562500e-02 : f32
    %47 = vector.broadcast %cst_26 : f32 to vector<1x32xf32>
    %48 = arith.mulf %46, %47 : vector<1x32xf32>
    %49 = arith.mulf %44, %44 : vector<64x32xf32>
    %cst_27 = arith.constant dense<0.000000e+00> : vector<32xf32>
    %50 = vector.multi_reduction <add>, %49, %cst_27 [0] : vector<64x32xf32> to vector<32xf32>
    %51 = vector.shape_cast %50 : vector<32xf32> to vector<1x32xf32>
    %cst_28 = arith.constant 1.562500e-02 : f32
    %52 = vector.broadcast %cst_28 : f32 to vector<1x32xf32>
    %53 = arith.mulf %51, %52 : vector<1x32xf32>
    %54 = arith.mulf %48, %48 : vector<1x32xf32>
    %55 = arith.subf %53, %54 : vector<1x32xf32>
    %c0_29 = arith.constant 0 : index
    %c0_30 = arith.constant 0 : index
    %56 = vector.load %arg9[%c0_29, %c0_30] : memref<1x32xf32, #tpu.memory_space<vmem>>, vector<1x32xf32>
    %57 = vector.broadcast %48 : vector<1x32xf32> to vector<64x32xf32>
    %58 = arith.subf %44, %57 : vector<64x32xf32>
    %59 = vector.broadcast %56 : vector<1x32xf32> to vector<64x32xf32>
    %60 = arith.mulf %59, %58 : vector<64x32xf32>
    %cst_31 = arith.constant 9.99999974E-6 : f32
    %61 = vector.broadcast %cst_31 : f32 to vector<1x32xf32>
    %62 = arith.addf %55, %61 : vector<1x32xf32>
    %63 = math.rsqrt %62 : vector<1x32xf32>
    %64 = vector.broadcast %63 : vector<1x32xf32> to vector<64x32xf32>
    %65 = arith.mulf %60, %64 : vector<64x32xf32>
    %c0_32 = arith.constant 0 : index
    %c0_33 = arith.constant 0 : index
    %66 = vector.load %arg10[%c0_32, %c0_33] : memref<1x32xf32, #tpu.memory_space<vmem>>, vector<1x32xf32>
    %67 = vector.broadcast %66 : vector<1x32xf32> to vector<64x32xf32>
    %68 = arith.addf %65, %67 : vector<64x32xf32>
    %c0_34 = arith.constant 0 : index
    %c0_35 = arith.constant 0 : index
    %69 = vector.load %arg21[%c0_34, %c0_35] : memref<64x64xf32, #tpu.memory_space<vmem>>, vector<64x32xf32>
    tpu.vector_store %arg21[%c0_34, %c0_35], %34 {strides = array<i32>} : memref<64x64xf32, #tpu.memory_space<vmem>>, vector<64x32xf32>,
    %c0_36 = arith.constant 0 : index
    %c32 = arith.constant 32 : index
    %70 = vector.load %arg21[%c0_36, %c32] : memref<64x64xf32, #tpu.memory_space<vmem>>, vector<64x32xf32>
    tpu.vector_store %arg21[%c0_36, %c32], %68 {strides = array<i32>} : memref<64x64xf32, #tpu.memory_space<vmem>>, vector<64x32xf32>,
    %c0_37 = arith.constant 0 : index
    %c0_38 = arith.constant 0 : index
    %71 = vector.load %arg21[%c0_37, %c0_38] : memref<64x64xf32, #tpu.memory_space<vmem>>, vector<64x64xf32>
    %72 = arith.truncf %71 : vector<64x64xf32> to vector<64x64xbf16>
    %c0_39 = arith.constant 0 : index
    %c0_40 = arith.constant 0 : index
    %73 = vector.load %arg11[%c0_39, %c0_40] : memref<64x128xbf16, #tpu.memory_space<vmem>>, vector<64x128xbf16>
    %cst_41 = arith.constant dense<0.000000e+00> : vector<64x128xf32>
    %74 = tpu.matmul %72, %73, %cst_41 {dimension_numbers = #tpu.dot_dimension_numbers<[1], [0], [0], [1], [0, 0, 1, 1], [], []>} : vector<64x64xbf16>, vector<64x128xbf16>, vector<64x128xf32> -> vector<64x128xf32>
    %c0_42 = arith.constant 0 : index
    %c0_43 = arith.constant 0 : index
    %75 = vector.load %arg12[%c0_42, %c0_43] : memref<1x128xf32, #tpu.memory_space<vmem>>, vector<1x128xf32>
    %76 = vector.broadcast %75 : vector<1x128xf32> to vector<64x128xf32>
    %77 = arith.addf %74, %76 : vector<64x128xf32>
    %78 = vector.shape_cast %77 : vector<64x128xf32> to vector<4x16x128xf32>
    %c0_44 = arith.constant 0 : index
    %c0_45 = arith.constant 0 : index
    %79 = vector.load %arg13[%c0_44, %c0_45] : memref<32x128xbf16, #tpu.memory_space<vmem>>, vector<32x128xbf16>
    %c0_46 = arith.constant 0 : index
    %c0_47 = arith.constant 0 : index
    %80 = vector.load %arg14[%c0_46, %c0_47] : memref<64x128xbf16, #tpu.memory_space<vmem>>, vector<64x128xbf16>
    %c0_48 = arith.constant 0 : index
    %c0_49 = arith.constant 0 : index
    %81 = vector.load %arg15[%c0_48, %c0_49] : memref<1x128xf32, #tpu.memory_space<vmem>>, vector<1x128xf32>
    %c0_50 = arith.constant 0 : index
    %c0_51 = arith.constant 0 : index
    %82 = vector.load %arg2[%c0_50, %c0_51] : memref<16x32xf32, #tpu.memory_space<vmem>>, vector<16x32xf32>
    %c0_52 = arith.constant 0 : index
    %c64 = arith.constant 64 : index
    %83 = vector.load %arg22[%c0_52, %c64] : memref<16x96xf32, #tpu.memory_space<vmem>>, vector<16x32xf32>
    tpu.vector_store %arg22[%c0_52, %c64], %82 {strides = array<i32>} : memref<16x96xf32, #tpu.memory_space<vmem>>, vector<16x32xf32>,
    %cst_53 = arith.constant 0.000000e+00 : f32
    %84 = vector.broadcast %cst_53 : f32 to vector<16x32xf32>
    %85 = vector.extract_strided_slice %78 {offsets = [0, 0, 0], sizes = [1, 16, 128], strides = [1, 1, 1]} : vector<4x16x128xf32> to vector<1x16x128xf32>
    %86 = vector.shape_cast %85 : vector<1x16x128xf32> to vector<16x128xf32>
    %87 = arith.truncf %84 : vector<16x32xf32> to vector<16x32xbf16>
    %cst_54 = arith.constant dense<0.000000e+00> : vector<16x128xf32>
    %88 = tpu.matmul %87, %79, %cst_54 {dimension_numbers = #tpu.dot_dimension_numbers<[1], [0], [0], [1], [0, 0, 1, 1], [], []>} : vector<16x32xbf16>, vector<32x128xbf16>, vector<16x128xf32> -> vector<16x128xf32>
    %89 = arith.addf %86, %88 : vector<16x128xf32>
    %90 = arith.negf %89 : vector<16x128xf32>
    %91 = math.exp %90 : vector<16x128xf32>
    %cst_55 = arith.constant 1.000000e+00 : f32
    %92 = vector.broadcast %cst_55 : f32 to vector<16x128xf32>
    %93 = arith.addf %92, %91 : vector<16x128xf32>
    %94 = arith.divf %92, %93 : vector<16x128xf32>
    %95 = math.tanh %89 : vector<16x128xf32>
    %96 = vector.extract_strided_slice %94 {offsets = [0, 0], sizes = [16, 32], strides = [1, 1]} : vector<16x128xf32> to vector<16x32xf32>
    %97 = vector.extract_strided_slice %94 {offsets = [0, 32], sizes = [16, 32], strides = [1, 1]} : vector<16x128xf32> to vector<16x32xf32>
    %98 = vector.extract_strided_slice %94 {offsets = [0, 96], sizes = [16, 32], strides = [1, 1]} : vector<16x128xf32> to vector<16x32xf32>
    %99 = vector.extract_strided_slice %95 {offsets = [0, 64], sizes = [16, 32], strides = [1, 1]} : vector<16x128xf32> to vector<16x32xf32>
    %100 = arith.mulf %97, %84 : vector<16x32xf32>
    %101 = arith.mulf %96, %99 : vector<16x32xf32>
    %102 = arith.addf %100, %101 : vector<16x32xf32>
    %103 = math.tanh %102 : vector<16x32xf32>
    %104 = arith.mulf %98, %103 : vector<16x32xf32>
    %c0_56 = arith.constant 0 : index
    %c0_57 = arith.constant 0 : index
    %105 = vector.load %arg22[%c0_56, %c0_57] : memref<16x96xf32, #tpu.memory_space<vmem>>, vector<16x32xf32>
    tpu.vector_store %arg22[%c0_56, %c0_57], %104 {strides = array<i32>} : memref<16x96xf32, #tpu.memory_space<vmem>>, vector<16x32xf32>,
    %c0_58 = arith.constant 0 : index
    %c32_59 = arith.constant 32 : index
    %106 = vector.load %arg22[%c0_58, %c32_59] : memref<16x96xf32, #tpu.memory_space<vmem>>, vector<16x32xf32>
    tpu.vector_store %arg22[%c0_58, %c32_59], %84 {strides = array<i32>} : memref<16x96xf32, #tpu.memory_space<vmem>>, vector<16x32xf32>,
    %c0_60 = arith.constant 0 : index
    %c0_61 = arith.constant 0 : index
    %107 = vector.load %arg22[%c0_60, %c0_61] : memref<16x96xf32, #tpu.memory_space<vmem>>, vector<16x64xf32>
    %108 = arith.truncf %107 : vector<16x64xf32> to vector<16x64xbf16>
    %cst_62 = arith.constant dense<0.000000e+00> : vector<16x128xf32>
    %109 = tpu.matmul %108, %80, %cst_62 {dimension_numbers = #tpu.dot_dimension_numbers<[1], [0], [0], [1], [0, 0, 1, 1], [], []>} : vector<16x64xbf16>, vector<64x128xbf16>, vector<16x128xf32> -> vector<16x128xf32>
    %110 = vector.broadcast %81 : vector<1x128xf32> to vector<16x128xf32>
    %111 = arith.addf %109, %110 : vector<16x128xf32>
    %112 = arith.negf %111 : vector<16x128xf32>
    %113 = math.exp %112 : vector<16x128xf32>
    %cst_63 = arith.constant 1.000000e+00 : f32
    %114 = vector.broadcast %cst_63 : f32 to vector<16x128xf32>
    %115 = arith.addf %114, %113 : vector<16x128xf32>
    %116 = arith.divf %114, %115 : vector<16x128xf32>
    %117 = math.tanh %111 : vector<16x128xf32>
    %118 = vector.extract_strided_slice %116 {offsets = [0, 0], sizes = [16, 32], strides = [1, 1]} : vector<16x128xf32> to vector<16x32xf32>
    %119 = vector.extract_strided_slice %116 {offsets = [0, 32], sizes = [16, 32], strides = [1, 1]} : vector<16x128xf32> to vector<16x32xf32>
    %120 = vector.extract_strided_slice %116 {offsets = [0, 96], sizes = [16, 32], strides = [1, 1]} : vector<16x128xf32> to vector<16x32xf32>
    %121 = vector.extract_strided_slice %117 {offsets = [0, 64], sizes = [16, 32], strides = [1, 1]} : vector<16x128xf32> to vector<16x32xf32>
    %122 = arith.mulf %119, %84 : vector<16x32xf32>
    %123 = arith.mulf %118, %121 : vector<16x32xf32>
    %124 = arith.addf %122, %123 : vector<16x32xf32>
    %125 = math.tanh %124 : vector<16x32xf32>
    %126 = arith.mulf %120, %125 : vector<16x32xf32>
    %127 = vector.extract_strided_slice %78 {offsets = [1, 0, 0], sizes = [1, 16, 128], strides = [1, 1, 1]} : vector<4x16x128xf32> to vector<1x16x128xf32>
    %128 = vector.shape_cast %127 : vector<1x16x128xf32> to vector<16x128xf32>
    %129 = arith.truncf %104 : vector<16x32xf32> to vector<16x32xbf16>
    %cst_64 = arith.constant dense<0.000000e+00> : vector<16x128xf32>
    %130 = tpu.matmul %129, %79, %cst_64 {dimension_numbers = #tpu.dot_dimension_numbers<[1], [0], [0], [1], [0, 0, 1, 1], [], []>} : vector<16x32xbf16>, vector<32x128xbf16>, vector<16x128xf32> -> vector<16x128xf32>
    %131 = arith.addf %128, %130 : vector<16x128xf32>
    %132 = arith.negf %131 : vector<16x128xf32>
    %133 = math.exp %132 : vector<16x128xf32>
    %cst_65 = arith.constant 1.000000e+00 : f32
    %134 = vector.broadcast %cst_65 : f32 to vector<16x128xf32>
    %135 = arith.addf %134, %133 : vector<16x128xf32>
    %136 = arith.divf %134, %135 : vector<16x128xf32>
    %137 = math.tanh %131 : vector<16x128xf32>
    %138 = vector.extract_strided_slice %136 {offsets = [0, 0], sizes = [16, 32], strides = [1, 1]} : vector<16x128xf32> to vector<16x32xf32>
    %139 = vector.extract_strided_slice %136 {offsets = [0, 32], sizes = [16, 32], strides = [1, 1]} : vector<16x128xf32> to vector<16x32xf32>
    %140 = vector.extract_strided_slice %136 {offsets = [0, 96], sizes = [16, 32], strides = [1, 1]} : vector<16x128xf32> to vector<16x32xf32>
    %141 = vector.extract_strided_slice %137 {offsets = [0, 64], sizes = [16, 32], strides = [1, 1]} : vector<16x128xf32> to vector<16x32xf32>
    %142 = arith.mulf %139, %102 : vector<16x32xf32>
    %143 = arith.mulf %138, %141 : vector<16x32xf32>
    %144 = arith.addf %142, %143 : vector<16x32xf32>
    %145 = math.tanh %144 : vector<16x32xf32>
    %146 = arith.mulf %140, %145 : vector<16x32xf32>
    %c0_66 = arith.constant 0 : index
    %c0_67 = arith.constant 0 : index
    %147 = vector.load %arg22[%c0_66, %c0_67] : memref<16x96xf32, #tpu.memory_space<vmem>>, vector<16x32xf32>
    tpu.vector_store %arg22[%c0_66, %c0_67], %146 {strides = array<i32>} : memref<16x96xf32, #tpu.memory_space<vmem>>, vector<16x32xf32>,
    %c0_68 = arith.constant 0 : index
    %c32_69 = arith.constant 32 : index
    %148 = vector.load %arg22[%c0_68, %c32_69] : memref<16x96xf32, #tpu.memory_space<vmem>>, vector<16x32xf32>
    tpu.vector_store %arg22[%c0_68, %c32_69], %126 {strides = array<i32>} : memref<16x96xf32, #tpu.memory_space<vmem>>, vector<16x32xf32>,
    %c0_70 = arith.constant 0 : index
    %c0_71 = arith.constant 0 : index
    %149 = vector.load %arg22[%c0_70, %c0_71] : memref<16x96xf32, #tpu.memory_space<vmem>>, vector<16x64xf32>
    %150 = arith.truncf %149 : vector<16x64xf32> to vector<16x64xbf16>
    %cst_72 = arith.constant dense<0.000000e+00> : vector<16x128xf32>
    %151 = tpu.matmul %150, %80, %cst_72 {dimension_numbers = #tpu.dot_dimension_numbers<[1], [0], [0], [1], [0, 0, 1, 1], [], []>} : vector<16x64xbf16>, vector<64x128xbf16>, vector<16x128xf32> -> vector<16x128xf32>
    %152 = vector.broadcast %81 : vector<1x128xf32> to vector<16x128xf32>
    %153 = arith.addf %151, %152 : vector<16x128xf32>
    %154 = arith.negf %153 : vector<16x128xf32>
    %155 = math.exp %154 : vector<16x128xf32>
    %cst_73 = arith.constant 1.000000e+00 : f32
    %156 = vector.broadcast %cst_73 : f32 to vector<16x128xf32>
    %157 = arith.addf %156, %155 : vector<16x128xf32>
    %158 = arith.divf %156, %157 : vector<16x128xf32>
    %159 = math.tanh %153 : vector<16x128xf32>
    %160 = vector.extract_strided_slice %158 {offsets = [0, 0], sizes = [16, 32], strides = [1, 1]} : vector<16x128xf32> to vector<16x32xf32>
    %161 = vector.extract_strided_slice %158 {offsets = [0, 32], sizes = [16, 32], strides = [1, 1]} : vector<16x128xf32> to vector<16x32xf32>
    %162 = vector.extract_strided_slice %158 {offsets = [0, 96], sizes = [16, 32], strides = [1, 1]} : vector<16x128xf32> to vector<16x32xf32>
    %163 = vector.extract_strided_slice %159 {offsets = [0, 64], sizes = [16, 32], strides = [1, 1]} : vector<16x128xf32> to vector<16x32xf32>
    %164 = arith.mulf %161, %124 : vector<16x32xf32>
    %165 = arith.mulf %160, %163 : vector<16x32xf32>
    %166 = arith.addf %164, %165 : vector<16x32xf32>
    %167 = math.tanh %166 : vector<16x32xf32>
    %168 = arith.mulf %162, %167 : vector<16x32xf32>
    %169 = vector.extract_strided_slice %78 {offsets = [2, 0, 0], sizes = [1, 16, 128], strides = [1, 1, 1]} : vector<4x16x128xf32> to vector<1x16x128xf32>
    %170 = vector.shape_cast %169 : vector<1x16x128xf32> to vector<16x128xf32>
    %171 = arith.truncf %146 : vector<16x32xf32> to vector<16x32xbf16>
    %cst_74 = arith.constant dense<0.000000e+00> : vector<16x128xf32>
    %172 = tpu.matmul %171, %79, %cst_74 {dimension_numbers = #tpu.dot_dimension_numbers<[1], [0], [0], [1], [0, 0, 1, 1], [], []>} : vector<16x32xbf16>, vector<32x128xbf16>, vector<16x128xf32> -> vector<16x128xf32>
    %173 = arith.addf %170, %172 : vector<16x128xf32>
    %174 = arith.negf %173 : vector<16x128xf32>
    %175 = math.exp %174 : vector<16x128xf32>
    %cst_75 = arith.constant 1.000000e+00 : f32
    %176 = vector.broadcast %cst_75 : f32 to vector<16x128xf32>
    %177 = arith.addf %176, %175 : vector<16x128xf32>
    %178 = arith.divf %176, %177 : vector<16x128xf32>
    %179 = math.tanh %173 : vector<16x128xf32>
    %180 = vector.extract_strided_slice %178 {offsets = [0, 0], sizes = [16, 32], strides = [1, 1]} : vector<16x128xf32> to vector<16x32xf32>
    %181 = vector.extract_strided_slice %178 {offsets = [0, 32], sizes = [16, 32], strides = [1, 1]} : vector<16x128xf32> to vector<16x32xf32>
    %182 = vector.extract_strided_slice %178 {offsets = [0, 96], sizes = [16, 32], strides = [1, 1]} : vector<16x128xf32> to vector<16x32xf32>
    %183 = vector.extract_strided_slice %179 {offsets = [0, 64], sizes = [16, 32], strides = [1, 1]} : vector<16x128xf32> to vector<16x32xf32>
    %184 = arith.mulf %181, %144 : vector<16x32xf32>
    %185 = arith.mulf %180, %183 : vector<16x32xf32>
    %186 = arith.addf %184, %185 : vector<16x32xf32>
    %187 = math.tanh %186 : vector<16x32xf32>
    %188 = arith.mulf %182, %187 : vector<16x32xf32>
    %c0_76 = arith.constant 0 : index
    %c0_77 = arith.constant 0 : index
    %189 = vector.load %arg22[%c0_76, %c0_77] : memref<16x96xf32, #tpu.memory_space<vmem>>, vector<16x32xf32>
    tpu.vector_store %arg22[%c0_76, %c0_77], %188 {strides = array<i32>} : memref<16x96xf32, #tpu.memory_space<vmem>>, vector<16x32xf32>,
    %c0_78 = arith.constant 0 : index
    %c32_79 = arith.constant 32 : index
    %190 = vector.load %arg22[%c0_78, %c32_79] : memref<16x96xf32, #tpu.memory_space<vmem>>, vector<16x32xf32>
    tpu.vector_store %arg22[%c0_78, %c32_79], %168 {strides = array<i32>} : memref<16x96xf32, #tpu.memory_space<vmem>>, vector<16x32xf32>,
    %c0_80 = arith.constant 0 : index
    %c0_81 = arith.constant 0 : index
    %191 = vector.load %arg22[%c0_80, %c0_81] : memref<16x96xf32, #tpu.memory_space<vmem>>, vector<16x64xf32>
    %192 = arith.truncf %191 : vector<16x64xf32> to vector<16x64xbf16>
    %cst_82 = arith.constant dense<0.000000e+00> : vector<16x128xf32>
    %193 = tpu.matmul %192, %80, %cst_82 {dimension_numbers = #tpu.dot_dimension_numbers<[1], [0], [0], [1], [0, 0, 1, 1], [], []>} : vector<16x64xbf16>, vector<64x128xbf16>, vector<16x128xf32> -> vector<16x128xf32>
    %194 = vector.broadcast %81 : vector<1x128xf32> to vector<16x128xf32>
    %195 = arith.addf %193, %194 : vector<16x128xf32>
    %196 = arith.negf %195 : vector<16x128xf32>
    %197 = math.exp %196 : vector<16x128xf32>
    %cst_83 = arith.constant 1.000000e+00 : f32
    %198 = vector.broadcast %cst_83 : f32 to vector<16x128xf32>
    %199 = arith.addf %198, %197 : vector<16x128xf32>
    %200 = arith.divf %198, %199 : vector<16x128xf32>
    %201 = math.tanh %195 : vector<16x128xf32>
    %202 = vector.extract_strided_slice %200 {offsets = [0, 0], sizes = [16, 32], strides = [1, 1]} : vector<16x128xf32> to vector<16x32xf32>
    %203 = vector.extract_strided_slice %200 {offsets = [0, 32], sizes = [16, 32], strides = [1, 1]} : vector<16x128xf32> to vector<16x32xf32>
    %204 = vector.extract_strided_slice %200 {offsets = [0, 96], sizes = [16, 32], strides = [1, 1]} : vector<16x128xf32> to vector<16x32xf32>
    %205 = vector.extract_strided_slice %201 {offsets = [0, 64], sizes = [16, 32], strides = [1, 1]} : vector<16x128xf32> to vector<16x32xf32>
    %206 = arith.mulf %203, %166 : vector<16x32xf32>
    %207 = arith.mulf %202, %205 : vector<16x32xf32>
    %208 = arith.addf %206, %207 : vector<16x32xf32>
    %209 = math.tanh %208 : vector<16x32xf32>
    %210 = arith.mulf %204, %209 : vector<16x32xf32>
    %211 = vector.extract_strided_slice %78 {offsets = [3, 0, 0], sizes = [1, 16, 128], strides = [1, 1, 1]} : vector<4x16x128xf32> to vector<1x16x128xf32>
    %212 = vector.shape_cast %211 : vector<1x16x128xf32> to vector<16x128xf32>
    %213 = arith.truncf %188 : vector<16x32xf32> to vector<16x32xbf16>
    %cst_84 = arith.constant dense<0.000000e+00> : vector<16x128xf32>
    %214 = tpu.matmul %213, %79, %cst_84 {dimension_numbers = #tpu.dot_dimension_numbers<[1], [0], [0], [1], [0, 0, 1, 1], [], []>} : vector<16x32xbf16>, vector<32x128xbf16>, vector<16x128xf32> -> vector<16x128xf32>
    %215 = arith.addf %212, %214 : vector<16x128xf32>
    %216 = arith.negf %215 : vector<16x128xf32>
    %217 = math.exp %216 : vector<16x128xf32>
    %cst_85 = arith.constant 1.000000e+00 : f32
    %218 = vector.broadcast %cst_85 : f32 to vector<16x128xf32>
    %219 = arith.addf %218, %217 : vector<16x128xf32>
    %220 = arith.divf %218, %219 : vector<16x128xf32>
    %221 = math.tanh %215 : vector<16x128xf32>
    %222 = vector.extract_strided_slice %220 {offsets = [0, 0], sizes = [16, 32], strides = [1, 1]} : vector<16x128xf32> to vector<16x32xf32>
    %223 = vector.extract_strided_slice %220 {offsets = [0, 32], sizes = [16, 32], strides = [1, 1]} : vector<16x128xf32> to vector<16x32xf32>
    %224 = vector.extract_strided_slice %220 {offsets = [0, 96], sizes = [16, 32], strides = [1, 1]} : vector<16x128xf32> to vector<16x32xf32>
    %225 = vector.extract_strided_slice %221 {offsets = [0, 64], sizes = [16, 32], strides = [1, 1]} : vector<16x128xf32> to vector<16x32xf32>
    %226 = arith.mulf %223, %186 : vector<16x32xf32>
    %227 = arith.mulf %222, %225 : vector<16x32xf32>
    %228 = arith.addf %226, %227 : vector<16x32xf32>
    %229 = math.tanh %228 : vector<16x32xf32>
    %230 = arith.mulf %224, %229 : vector<16x32xf32>
    %c0_86 = arith.constant 0 : index
    %c0_87 = arith.constant 0 : index
    %231 = vector.load %arg22[%c0_86, %c0_87] : memref<16x96xf32, #tpu.memory_space<vmem>>, vector<16x32xf32>
    tpu.vector_store %arg22[%c0_86, %c0_87], %230 {strides = array<i32>} : memref<16x96xf32, #tpu.memory_space<vmem>>, vector<16x32xf32>,
    %c0_88 = arith.constant 0 : index
    %c32_89 = arith.constant 32 : index
    %232 = vector.load %arg22[%c0_88, %c32_89] : memref<16x96xf32, #tpu.memory_space<vmem>>, vector<16x32xf32>
    tpu.vector_store %arg22[%c0_88, %c32_89], %210 {strides = array<i32>} : memref<16x96xf32, #tpu.memory_space<vmem>>, vector<16x32xf32>,
    %c0_90 = arith.constant 0 : index
    %c0_91 = arith.constant 0 : index
    %233 = vector.load %arg22[%c0_90, %c0_91] : memref<16x96xf32, #tpu.memory_space<vmem>>, vector<16x64xf32>
    %234 = arith.truncf %233 : vector<16x64xf32> to vector<16x64xbf16>
    %cst_92 = arith.constant dense<0.000000e+00> : vector<16x128xf32>
    %235 = tpu.matmul %234, %80, %cst_92 {dimension_numbers = #tpu.dot_dimension_numbers<[1], [0], [0], [1], [0, 0, 1, 1], [], []>} : vector<16x64xbf16>, vector<64x128xbf16>, vector<16x128xf32> -> vector<16x128xf32>
    %236 = vector.broadcast %81 : vector<1x128xf32> to vector<16x128xf32>
    %237 = arith.addf %235, %236 : vector<16x128xf32>
    %238 = arith.negf %237 : vector<16x128xf32>
    %239 = math.exp %238 : vector<16x128xf32>
    %cst_93 = arith.constant 1.000000e+00 : f32
    %240 = vector.broadcast %cst_93 : f32 to vector<16x128xf32>
    %241 = arith.addf %240, %239 : vector<16x128xf32>
    %242 = arith.divf %240, %241 : vector<16x128xf32>
    %243 = math.tanh %237 : vector<16x128xf32>
    %244 = vector.extract_strided_slice %242 {offsets = [0, 0], sizes = [16, 32], strides = [1, 1]} : vector<16x128xf32> to vector<16x32xf32>
    %245 = vector.extract_strided_slice %242 {offsets = [0, 32], sizes = [16, 32], strides = [1, 1]} : vector<16x128xf32> to vector<16x32xf32>
    %246 = vector.extract_strided_slice %242 {offsets = [0, 96], sizes = [16, 32], strides = [1, 1]} : vector<16x128xf32> to vector<16x32xf32>
    %247 = vector.extract_strided_slice %243 {offsets = [0, 64], sizes = [16, 32], strides = [1, 1]} : vector<16x128xf32> to vector<16x32xf32>
    %248 = arith.mulf %245, %208 : vector<16x32xf32>
    %249 = arith.mulf %244, %247 : vector<16x32xf32>
    %250 = arith.addf %248, %249 : vector<16x32xf32>
    %251 = math.tanh %250 : vector<16x32xf32>
    %252 = arith.mulf %246, %251 : vector<16x32xf32>
    %c0_94 = arith.constant 0 : index
    %c0_95 = arith.constant 0 : index
    %253 = vector.load %arg22[%c0_94, %c0_95] : memref<16x96xf32, #tpu.memory_space<vmem>>, vector<16x32xf32>
    tpu.vector_store %arg22[%c0_94, %c0_95], %230 {strides = array<i32>} : memref<16x96xf32, #tpu.memory_space<vmem>>, vector<16x32xf32>,
    %c0_96 = arith.constant 0 : index
    %c32_97 = arith.constant 32 : index
    %254 = vector.load %arg22[%c0_96, %c32_97] : memref<16x96xf32, #tpu.memory_space<vmem>>, vector<16x32xf32>
    tpu.vector_store %arg22[%c0_96, %c32_97], %252 {strides = array<i32>} : memref<16x96xf32, #tpu.memory_space<vmem>>, vector<16x32xf32>,
    %c0_98 = arith.constant 0 : index
    %c0_99 = arith.constant 0 : index
    %255 = vector.load %arg22[%c0_98, %c0_99] : memref<16x96xf32, #tpu.memory_space<vmem>>, vector<16x96xf32>
    %256 = arith.truncf %255 : vector<16x96xf32> to vector<16x96xbf16>
    %c0_100 = arith.constant 0 : index
    %c0_101 = arith.constant 0 : index
    %257 = vector.load %arg16[%c0_100, %c0_101] : memref<96x32xbf16, #tpu.memory_space<vmem>>, vector<96x32xbf16>
    %cst_102 = arith.constant dense<0.000000e+00> : vector<16x32xf32>
    %258 = tpu.matmul %256, %257, %cst_102 {dimension_numbers = #tpu.dot_dimension_numbers<[1], [0], [0], [1], [0, 0, 1, 1], [], []>} : vector<16x96xbf16>, vector<96x32xbf16>, vector<16x32xf32> -> vector<16x32xf32>
    %c0_103 = arith.constant 0 : index
    %c0_104 = arith.constant 0 : index
    %259 = vector.load %arg17[%c0_103, %c0_104] : memref<1x32xf32, #tpu.memory_space<vmem>>, vector<1x32xf32>
    %260 = vector.broadcast %259 : vector<1x32xf32> to vector<16x32xf32>
    %261 = arith.addf %258, %260 : vector<16x32xf32>
    %cst_105 = arith.constant 0.000000e+00 : f32
    %262 = vector.broadcast %cst_105 : f32 to vector<16x32xf32>
    %263 = arith.maximumf %261, %262 : vector<16x32xf32>
    %c0_106 = arith.constant 0 : index
    %c0_107 = arith.constant 0 : index
    %264 = vector.load %arg18[%c0_106, %c0_107] : memref<1x32xf32, #tpu.memory_space<vmem>>, vector<1x32xf32>
    %265 = vector.broadcast %264 : vector<1x32xf32> to vector<16x32xf32>
    %266 = arith.mulf %263, %265 : vector<16x32xf32>
    %cst_108 = arith.constant dense<0.000000e+00> : vector<16xf32>
    %267 = vector.multi_reduction <add>, %266, %cst_108 [1] : vector<16x32xf32> to vector<16xf32>
    %268 = vector.shape_cast %267 : vector<16xf32> to vector<16x1xf32>
    %c0_109 = arith.constant 0 : index
    %c0_110 = arith.constant 0 : index
    %269 = vector.load %arg19[%c0_109, %c0_110] : memref<1x1xf32, #tpu.memory_space<vmem>>, vector<1x1xf32>
    %270 = vector.broadcast %269 : vector<1x1xf32> to vector<16x1xf32>
    %271 = arith.addf %268, %270 : vector<16x1xf32>
    %cst_111 = arith.constant 0.000000e+00 : f32
    %272 = vector.broadcast %cst_111 : f32 to vector<16x1xf32>
    %273 = arith.maximumf %271, %272 : vector<16x1xf32>
    %c0_112 = arith.constant 0 : index
    %c0_113 = arith.constant 0 : index
    %274 = vector.load %arg20[%c0_112, %c0_113] : memref<16x1xf32, #tpu.memory_space<vmem>>, vector<16x1xf32>
    tpu.vector_store %arg20[%c0_112, %c0_113], %273 {strides = array<i32>} : memref<16x1xf32, #tpu.memory_space<vmem>>, vector<16x1xf32>,
    return
  }
}

</mosaic_0001>

<bundles_post_ra>
// kernel: mpnn_lstm_forward.1
= control target key start
LH: loop header
LB: loop body
LE: loop exit
PB: predicated region body
PF: predicated region fallthrough
CT: control target
= control target key end

     0   :  { %vm118_vm0 = vcmask 1043456   ;;  %vm105_vm1 = vcmask 64512   ;;  %vm179_vm2 = vcmask 523264   ;;  %vm229_vm3 = vcmask 261120   ;;  %s2662_s3 = inlined_call_operand.vmem [shape: bf16[8,32], index: 3, kind: input, shape index: {}]   ;;  %s2663_s1 = inlined_call_operand.vmem [shape: bf16[64,8], index: 1, kind: input, shape index: {}]   ;;  %s2664_s4 = inlined_call_operand.vmem [shape: f32[1,32], index: 4, kind: input, shape index: {}]   ;;  %s2665_s0 = inlined_call_operand.vmem [shape: bf16[64,64], index: 0, kind: input, shape index: {}]   ;;  %s2666_s5 = inlined_call_operand.vmem [shape: f32[1,32], index: 5, kind: input, shape index: {}]   ;;  %s2667_s6 = inlined_call_operand.vmem [shape: f32[1,32], index: 6, kind: input, shape index: {}]   ;;  %s2668_s7 = inlined_call_operand.vmem [shape: bf16[32,32], index: 7, kind: input, shape index: {}]   ;;  %s2669_s8 = inlined_call_operand.vmem [shape: f32[1,32], index: 8, kind: input, shape index: {}]   ;;  %s2670_s9 = inlined_call_operand.vmem [shape: f32[1,32], index: 9, kind: input, shape index: {}]   ;;  %s2671_s10 = inlined_call_operand.vmem [shape: f32[1,32], index: 10, kind: input, shape index: {}]   ;;  %s2672_s13 = inlined_call_operand.vmem [shape: bf16[32,128], index: 13, kind: input, shape index: {}]   ;;  %s2673_s11 = inlined_call_operand.vmem [shape: bf16[64,128], index: 11, kind: input, shape index: {}]   ;;  %s2674_s12 = inlined_call_operand.vmem [shape: f32[1,128], index: 12, kind: input, shape index: {}]   ;;  %s2675_s2 = inlined_call_operand.vmem [shape: f32[16,32], index: 2, kind: input, shape index: {}]   ;;  %s2676_s14 = inlined_call_operand.vmem [shape: bf16[64,128], index: 14, kind: input, shape index: {}]   ;;  %s2677_s15 = inlined_call_operand.vmem [shape: f32[1,128], index: 15, kind: input, shape index: {}]   ;;  %s2678_s16 = inlined_call_operand.vmem [shape: bf16[96,32], index: 16, kind: input, shape index: {}]   ;;  %s2679_s17 = inlined_call_operand.vmem [shape: f32[1,32], index: 17, kind: input, shape index: {}]   ;;  %s2680_s18 = inlined_call_operand.vmem [shape: f32[1,32], index: 18, kind: input, shape index: {}]   ;;  %s2681_s19 = inlined_call_operand.<no memory space> [shape: f32[1,1], index: 19, kind: input, shape index: {}]   ;;  %s2682_s20 = inlined_call_operand.vmem [shape: f32[16,1], index: 20, kind: output, shape index: {}]  }
   0x1   :  { %2685 = sst [smem:[#allocation5_spill]] %s2662_s3  ;;  %vm586_vm10 = vcmask 523520  }
   0x2   :  { %2686 = sst [smem:[#allocation6_spill]] %s2663_s1 }
   0x3   :  { %2687 = sst [smem:[#allocation7_spill]] %s2664_s4 }
   0x4   :  { %2688 = sst [smem:[#allocation8_spill]] %s2665_s0 }
   0x5   :  { %2689 = sst [smem:[#allocation9_spill]] %s2666_s5 }
   0x6   :  { %s2690_s23 = sld [smem:[#allocation5_spill]] }
   0x7   :  { %s2691_s25 = sld [smem:[#allocation6_spill]] }
   0x8   :  { %s2692_s21 = sld [smem:[#allocation8_spill]] }
   0x9   :  { %s2693_s27 = sld [smem:[#allocation7_spill]] }
   0xc   :  { %v84_v0 = vld [vmem:[%s2690_s23] sm:$0xf] }
   0xd   :  { %v120_v1 = vsel %vm118_vm0, %v84_v0, 0  ;;  %v1847_v2 = vld [vmem:[%s2691_s25] sm:$0xff]  ;;  %v1848_v3 = vld [vmem:[%s2691_s25 + $0x8] sm:$0xff]  ;;  %v1849_v4 = vld [vmem:[%s2691_s25 + $0x10] sm:$0xff] }
   0xe   :  { %129 = vmatpush.bf16.msra.mxu0 %v120_v1  ;;  %v1850_v5 = vld [vmem:[%s2691_s25 + $0x18] sm:$0xff]  ;;  %v2143_v18 = vld [vmem:[%s2692_s21] sm:$0xff]  ;;  %v2150_v19 = vld [vmem:[%s2692_s21 + $0x8] sm:$0xff] }
   0xf   :  { %v2157_v20 = vld [vmem:[%s2692_s21 + $0x10] sm:$0xff]  ;;  %v2164_v21 = vld [vmem:[%s2692_s21 + $0x18] sm:$0xff]  ;;  %v1873_v27 = vld [vmem:[%s2693_s27] ss:$0 sm:$0xff]  ;;  %s2694_s21 = sld [smem:[#allocation9_spill]] }
  0x11   :  { %1711 = vmatmul.msk.bf16.vlgmr.msra.gmra.mxu0 %vm105_vm1, %v1847_v2 }
  0x21   :  { %1712 = vmatmul.msk.bf16.gmra.mxu0 %vm105_vm1, %v1848_v3 }
  0x31   :  { %1713 = vmatmul.msk.bf16.gmra.mxu0 %vm105_vm1, %v1849_v4 }
  0x41   :  { %1714 = vmatmul.msk.bf16.gmra.mxu0 %vm105_vm1, %v1850_v5 }
  0x8e   :  { %v131_v6 = vpop.f32.mrf.mxu0 }
  0x96   :  { %v133_v7 = vpop.f32.mrf.mxu0 }
  0x97   :  { %v151_v17 = vpack.c.bf16 %v133_v7, %v131_v6 }
  0x9e   :  { %v136_v8 = vpop.f32.mrf.mxu0 }
  0xa6   :  { %v138_v9 = vpop.f32.mrf.mxu0 }
  0xa7   :  { %v152_v16 = vpack.c.bf16 %v138_v9, %v136_v8 }
  0xae   :  { %v141_v10 = vpop.f32.mrf.mxu0 }
  0xb6   :  { %v143_v11 = vpop.f32.mrf.mxu0 }
  0xb7   :  { %v153_v15 = vpack.c.bf16 %v143_v11, %v141_v10 }
  0xbe   :  { %v146_v12 = vpop.f32.mrf.mxu0 }
  0xc6   :  { %v148_v13 = vpop.f32.mrf.mxu0 }
  0xc7   :  { %v154_v14 = vpack.c.bf16 %v148_v13, %v146_v12 }
  0xc9   :  { %196 = vmatpush.bf16.msra.mxu1 %v154_v14 }
  0xcd   :  { %197 = vmatpush.bf16.msra.mxu1 %v153_v15 }
  0xd1   :  { %198 = vmatpush.bf16.msra.mxu1 %v152_v16 }
  0xd5   :  { %199 = vmatpush.bf16.msra.mxu1 %v151_v17 }
  0xd8   :  { %1731 = vmatmul.msk.bf16.vlgmr.msra.gmra.mxu1 %vm179_vm2, %v2143_v18 }
  0xe8   :  { %1732 = vmatmul.msk.bf16.gmra.mxu1 %vm179_vm2, %v2150_v19 }
  0xf8   :  { %1733 = vmatmul.msk.bf16.gmra.mxu1 %vm179_vm2, %v2157_v20 }
 0x108   :  { %1734 = vmatmul.msk.bf16.gmra.mxu1 %vm179_vm2, %v2164_v21 }
 0x155   :  { %v201_v22 = vpop.f32.mrf.mxu1 }
 0x156   :  { %v202_v29 = vadd.f32 %v1873_v27, %v201_v22 }
 0x158   :  { %v2173_v34 = vmax.f32 %v202_v29, 0.0 }
 0x15a   :  { %v252_v40 = vmul.f32 %v2173_v34, %v2173_v34  ;;  %v230_v44 = vsel %vm229_vm3, %v2173_v34, 0.0 }
 0x15c   :  { %v260_v51 = vsel %vm229_vm3, %v252_v40, 0.0 }
 0x15d   :  { %v203_v23 = vpop.f32.mrf.mxu1 }
 0x15e   :  { %v204_v28 = vadd.f32 %v1873_v27, %v203_v23 }
 0x160   :  { %v2171_v31 = vmax.f32 %v204_v28, 0.0  ;;  %v1852_v28 = vld [vmem:[%s2668_s7 + $0x8] sm:$0xff] }
 0x161   :  { %373 = vmatpush.bf16.msra.mxu2 %v1852_v28 }
 0x162   :  { %v253_v37 = vmul.f32 %v2171_v31, %v2171_v31  ;;  %v231_v41 = vsel %vm229_vm3, %v2171_v31, 0.0 }
 0x163   :  { %v232_v52 = vadd.f32 %v231_v41, %v230_v44 }
 0x164   :  { %v261_v45 = vsel %vm229_vm3, %v253_v37, 0.0 }
 0x165   :  { %v206_v24 = vpop.f32.mrf.mxu1  ;;  %v262_v57 = vadd.f32 %v261_v45, %v260_v51 }
 0x166   :  { %v207_v30 = vadd.f32 %v1873_v27, %v206_v24 }
 0x168   :  { %v2175_v35 = vmax.f32 %v207_v30, 0.0 }
 0x16a   :  { %v254_v42 = vmul.f32 %v2175_v35, %v2175_v35  ;;  %v233_v47 = vsel %vm229_vm3, %v2175_v35, 0.0 }
 0x16b   :  { %v234_v58 = vadd.f32 %v233_v47, %v232_v52 }
 0x16c   :  { %v263_v53 = vsel %vm229_vm3, %v254_v42, 0.0 }
 0x16d   :  { %v208_v25 = vpop.f32.mrf.mxu1  ;;  %v264_v62 = vadd.f32 %v263_v53, %v262_v57 }
 0x16e   :  { %v209_v33 = vadd.f32 %v1873_v27, %v208_v25 }
 0x170   :  { %v2179_v38 = vmax.f32 %v209_v33, 0.0 }
 0x172   :  { %v255_v48 = vmul.f32 %v2179_v38, %v2179_v38  ;;  %v235_v54 = vsel %vm229_vm3, %v2179_v38, 0.0 }
 0x173   :  { %v236_v63 = vadd.f32 %v235_v54, %v234_v58 }
 0x174   :  { %v265_v59 = vsel %vm229_vm3, %v255_v48, 0.0 }
 0x175   :  { %v211_v26 = vpop.f32.mrf.mxu1  ;;  %v266_v3 = vadd.f32 %v265_v59, %v264_v62 }
 0x176   :  { %v212_v36 = vadd.f32 %v1873_v27, %v211_v26 }
 0x178   :  { %v2187_v43 = vmax.f32 %v212_v36, 0.0 }
 0x17a   :  { %v256_v55 = vmul.f32 %v2187_v43, %v2187_v43  ;;  %v237_v60 = vsel %vm229_vm3, %v2187_v43, 0.0 }
 0x17b   :  { %v238_v4 = vadd.f32 %v237_v60, %v236_v63 }
 0x17c   :  { %v267_v0 = vsel %vm229_vm3, %v256_v55, 0.0  ;;  %v1874_v55 = vld [vmem:[%s2694_s21] ss:$0 sm:$0xff] }
 0x17d   :  { %v213_v32 = vpop.f32.mrf.mxu1  ;;  %v268_v9 = vadd.f32 %v267_v0, %v266_v3 }
 0x17e   :  { %v214_v39 = vadd.f32 %v1873_v27, %v213_v32  ;;  %v1851_v32 = vld [vmem:[%s2668_s7] sm:$0xff] }
 0x17f   :  { %374 = vmatpush.bf16.msra.mxu2 %v1851_v32 }
 0x180   :  { %v2196_v49 = vmax.f32 %v214_v39, 0.0 }
 0x182   :  { %v257_v61 = vmul.f32 %v2196_v49, %v2196_v49  ;;  %v239_v1 = vsel %vm229_vm3, %v2196_v49, 0.0 }
 0x183   :  { %v240_v10 = vadd.f32 %v239_v1, %v238_v4 }
 0x184   :  { %v269_v6 = vsel %vm229_vm3, %v257_v61, 0.0 }
 0x185   :  { %v216_v46 = vpop.f32.mrf.mxu1  ;;  %v270_v13 = vadd.f32 %v269_v6, %v268_v9 }
 0x186   :  { %v217_v50 = vadd.f32 %v1873_v27, %v216_v46 }
 0x188   :  { %v2204_v56 = vmax.f32 %v217_v50, 0.0 }
 0x18a   :  { %v258_v2 = vmul.f32 %v2204_v56, %v2204_v56  ;;  %v241_v7 = vsel %vm229_vm3, %v2204_v56, 0.0 }
 0x18b   :  { %v242_v14 = vadd.f32 %v241_v7, %v240_v10 }
 0x18c   :  { %v271_v11 = vsel %vm229_vm3, %v258_v2, 0.0 }
 0x18d   :  { %v218_v5 = vpop.f32.mrf.mxu1  ;;  %v272_v17 = vadd.f32 %v271_v11, %v270_v13 }
 0x18e   :  { %v219_v8 = vadd.f32 %v1873_v27, %v218_v5 }
 0x190   :  { %v2220_v12 = vmax.f32 %v219_v8, 0.0 }
 0x192   :  { %v243_v15 = vsel %vm229_vm3, %v2220_v12, 0.0  ;;  %v259_v16 = vmul.f32 %v2220_v12, %v2220_v12 }
 0x193   :  { %v244_v22 = vadd.f32 %v243_v15, %v242_v14 }
 0x194   :  { %v273_v23 = vsel %vm229_vm3, %v259_v16, 0.0 }
 0x195   :  { %v245_v24 = vrot.slane %v244_v22, 4  ;;  %v274_v25 = vadd.f32 %v273_v23, %v272_v17 }
 0x197   :  { %v246_v26 = vadd.f32 %v245_v24, %v244_v22  ;;  %v275_v27 = vrot.slane %v274_v25, 4 }
 0x199   :  { %v247_v29 = vrot.slane %v246_v26, 2  ;;  %v276_v30 = vadd.f32 %v275_v27, %v274_v25 }
 0x19b   :  { %v248_v33 = vadd.f32 %v247_v29, %v246_v26  ;;  %v277_v36 = vrot.slane %v276_v30, 2 }
 0x19d   :  { %v249_v37 = vrot.slane %v248_v33, 1  ;;  %v278_v39 = vadd.f32 %v277_v36, %v276_v30 }
 0x19f   :  { %v250_v40 = vadd.f32 %v249_v37, %v248_v33  ;;  %v279_v41 = vrot.slane %v278_v39, 1 }
 0x1a1   :  { %v251_v42 = vmul.f32 0.015625, %v250_v40  ;;  %v280_v44 = vadd.f32 %v279_v41, %v278_v39 }
 0x1a3   :  { %v281_v45 = vmul.f32 0.015625, %v280_v44  ;;  %v282_v46 = vmul.f32 %v251_v42, %v251_v42  ;;  %v285_v54 = vsub.f32 %v2173_v34, %v251_v42  ;;  %v286_v57 = vsub.f32 %v2171_v31, %v251_v42  ;;  %v1875_v31 = vld [vmem:[%s2667_s6] ss:$0 sm:$0xff] }
 0x1a4   :  { %v287_v58 = vsub.f32 %v2175_v35, %v251_v42  ;;  %v288_v59 = vsub.f32 %v2179_v38, %v251_v42  ;;  %v289_v60 = vsub.f32 %v2187_v43, %v251_v42  ;;  %v290_v62 = vsub.f32 %v2196_v49, %v251_v42 }
 0x1a5   :  { %v283_v47 = vsub.f32 %v281_v45, %v282_v46  ;;  %v291_v63 = vsub.f32 %v2204_v56, %v251_v42  ;;  %v292_v34 = vsub.f32 %v2220_v12, %v251_v42  ;;  %v296_v1 = vmul.f32 %v1874_v55, %v285_v54 }
 0x1a6   :  { %v297_v2 = vmul.f32 %v1874_v55, %v286_v57  ;;  %v298_v35 = vmul.f32 %v1874_v55, %v287_v58  ;;  %v299_v38 = vmul.f32 %v1874_v55, %v288_v59  ;;  %v300_v3 = vmul.f32 %v1874_v55, %v289_v60 }
 0x1a7   :  { %v304_v48 = vadd.f32 1e-05, %v283_v47  ;;  %v301_v4 = vmul.f32 %v1874_v55, %v290_v62  ;;  %v302_v5 = vmul.f32 %v1874_v55, %v291_v63  ;;  %v303_v8 = vmul.f32 %v1874_v55, %v292_v34 }
 0x1a9   :  { %1884 = vrsqrt.f32 %v304_v48  ;;  %vm311_vm5 = vweird.f32 %v304_v48 }
 0x1af   :  { %v1885_v50 = vpop.eup %1884 }
 0x1b0   :  { %v306_v51 = vmul.f32 %v1885_v50, %v304_v48  ;;  %vm312_vm4 = vweird.f32 %v1885_v50 }
 0x1b1   :  { %vm313_vm6 = vmor %vm311_vm5, %vm312_vm4  ;;  %vm707_vm5 = vcmask 785920  }
 0x1b2   :  { %v307_v52 = vmul.f32 %v1885_v50, %v306_v51 }
 0x1b4   :  { %v308_v53 = vmul.f32 0.5, %v307_v52  ;;  %v1876_v52 = vld [vmem:[%s2669_s8] ss:$0 sm:$0xff] }
 0x1b6   :  { %v309_v61 = vsub.f32 1.5, %v308_v53 }
 0x1b8   :  { %v310_v0 = vmul.f32 %v1885_v50, %v309_v61 }
 0x1ba   :  { %v314_v43 = vsel %vm313_vm6, %v1885_v50, %v310_v0 }
 0x1bb   :  { %v315_v49 = vmul.f32 %v314_v43, %v296_v1  ;;  %v316_v6 = vmul.f32 %v314_v43, %v297_v2  ;;  %v317_v56 = vmul.f32 %v314_v43, %v298_v35  ;;  %v318_v7 = vmul.f32 %v314_v43, %v299_v38 }
 0x1bc   :  { %v319_v9 = vmul.f32 %v314_v43, %v300_v3  ;;  %v320_v10 = vmul.f32 %v314_v43, %v301_v4  ;;  %v321_v14 = vmul.f32 %v314_v43, %v302_v5  ;;  %v322_v16 = vmul.f32 %v314_v43, %v303_v8 }
 0x1bd   :  { %v327_v11 = vadd.f32 %v1875_v31, %v315_v49  ;;  %v328_v12 = vadd.f32 %v1875_v31, %v316_v6  ;;  %v329_v13 = vadd.f32 %v1875_v31, %v317_v56  ;;  %v330_v15 = vadd.f32 %v1875_v31, %v318_v7 }
 0x1be   :  { %v331_v22 = vadd.f32 %v1875_v31, %v319_v9  ;;  %v332_v23 = vadd.f32 %v1875_v31, %v320_v10  ;;  %v333_v24 = vadd.f32 %v1875_v31, %v321_v14  ;;  %v334_v25 = vadd.f32 %v1875_v31, %v322_v16 }
 0x1bf   :  { %v335_v17 = vpack.c.bf16 %v328_v12, %v327_v11  ;;  %546 = vst.msk [vmem:[#allocation2] sm:$0xff] %vm229_vm3, %v327_v11  ;;  %v336_v26 = vpack.c.bf16 %v330_v15, %v329_v13 }
 0x1c0   :  { %547 = vst.msk [vmem:[#allocation2 + $0x8] sm:$0xff] %vm229_vm3, %v328_v12  ;;  %v337_v27 = vpack.c.bf16 %v332_v23, %v331_v22  ;;  %v338_v28 = vpack.c.bf16 %v334_v25, %v333_v24 }
 0x1c1   :  { %1743 = vmatmul.msk.bf16.vlgmr.msra.gmra.mxu2 %vm229_vm3, %v335_v17  ;;  %548 = vst.msk [vmem:[#allocation2 + $0x10] sm:$0xff] %vm229_vm3, %v329_v13 }
 0x1c2   :  { %549 = vst.msk [vmem:[#allocation2 + $0x18] sm:$0xff] %vm229_vm3, %v330_v15 }
 0x1c3   :  { %550 = vst.msk [vmem:[#allocation2 + $0x20] sm:$0xff] %vm229_vm3, %v331_v22 }
 0x1c4   :  { %551 = vst.msk [vmem:[#allocation2 + $0x28] sm:$0xff] %vm229_vm3, %v332_v23 }
 0x1c5   :  { %552 = vst.msk [vmem:[#allocation2 + $0x30] sm:$0xff] %vm229_vm3, %v333_v24 }
 0x1c6   :  { %553 = vst.msk [vmem:[#allocation2 + $0x38] sm:$0xff] %vm229_vm3, %v334_v25 }
 0x1d1   :  { %1744 = vmatmul.msk.bf16.gmra.mxu2 %vm229_vm3, %v336_v26 }
 0x1e1   :  { %1745 = vmatmul.msk.bf16.gmra.mxu2 %vm229_vm3, %v337_v27 }
 0x1f1   :  { %1746 = vmatmul.msk.bf16.gmra.mxu2 %vm229_vm3, %v338_v28 }
 0x244   :  { %v376_v29 = vpop.f32.mrf.mxu2 }
 0x24c   :  { %v378_v30 = vpop.f32.mrf.mxu2 }
 0x24d   :  { %v396_v45 = vpack.c.bf16 %v378_v30, %v376_v29 }
 0x254   :  { %v381_v32 = vpop.f32.mrf.mxu2 }
 0x25c   :  { %v383_v33 = vpop.f32.mrf.mxu2 }
 0x25d   :  { %v397_v44 = vpack.c.bf16 %v383_v33, %v381_v32 }
 0x264   :  { %v386_v36 = vpop.f32.mrf.mxu2 }
 0x26c   :  { %v388_v37 = vpop.f32.mrf.mxu2 }
 0x26d   :  { %v398_v42 = vpack.c.bf16 %v388_v37, %v386_v36 }
 0x274   :  { %v391_v39 = vpop.f32.mrf.mxu2 }
 0x27c   :  { %v393_v40 = vpop.f32.mrf.mxu2 }
 0x27d   :  { %v399_v41 = vpack.c.bf16 %v393_v40, %v391_v39 }
 0x27f   :  { %408 = vmatpush.bf16.msra.mxu3 %v399_v41 }
 0x283   :  { %409 = vmatpush.bf16.msra.mxu3 %v398_v42 }
 0x287   :  { %410 = vmatpush.bf16.msra.mxu3 %v397_v44 }
 0x28b   :  { %411 = vmatpush.bf16.msra.mxu3 %v396_v45 }
 0x28e   :  { %1747 = vmatmul.msk.bf16.vlgmr.msra.gmra.mxu3 %vm179_vm2, %v2143_v18 }
 0x29e   :  { %1748 = vmatmul.msk.bf16.gmra.mxu3 %vm179_vm2, %v2150_v19 }
 0x2ae   :  { %1749 = vmatmul.msk.bf16.gmra.mxu3 %vm179_vm2, %v2157_v20 }
 0x2be   :  { %1750 = vmatmul.msk.bf16.gmra.mxu3 %vm179_vm2, %v2164_v21 }
 0x311   :  { %v413_v46 = vpop.f32.mrf.mxu3 }
 0x312   :  { %v414_v18 = vadd.f32 %v1876_v52, %v413_v46 }
 0x314   :  { %v2272_v20 = vmax.f32 %v414_v18, 0.0 }
 0x316   :  { %v463_v62 = vmul.f32 %v2272_v20, %v2272_v20  ;;  %v441_v1 = vsel %vm229_vm3, %v2272_v20, 0.0 }
 0x318   :  { %v471_v4 = vsel %vm229_vm3, %v463_v62, 0.0 }
 0x319   :  { %v415_v47 = vpop.f32.mrf.mxu3 }
 0x31a   :  { %v416_v53 = vadd.f32 %v1876_v52, %v415_v47 }
 0x31c   :  { %v2270_v55 = vmax.f32 %v416_v53, 0.0 }
 0x31e   :  { %v464_v59 = vmul.f32 %v2270_v55, %v2270_v55  ;;  %v442_v63 = vsel %vm229_vm3, %v2270_v55, 0.0 }
 0x31f   :  { %v443_v5 = vadd.f32 %v442_v63, %v441_v1 }
 0x320   :  { %v472_v2 = vsel %vm229_vm3, %v464_v59, 0.0  ;;  %v1877_v59 = vld [vmem:[%s2670_s9] ss:$0 sm:$0xff] }
 0x321   :  { %v418_v48 = vpop.f32.mrf.mxu3  ;;  %v473_v8 = vadd.f32 %v472_v2, %v471_v4 }
 0x322   :  { %v419_v54 = vadd.f32 %v1876_v52, %v418_v48 }
 0x324   :  { %v2274_v58 = vmax.f32 %v419_v54, 0.0 }
 0x326   :  { %v465_v34 = vmul.f32 %v2274_v58, %v2274_v58  ;;  %v444_v35 = vsel %vm229_vm3, %v2274_v58, 0.0 }
 0x327   :  { %v445_v9 = vadd.f32 %v444_v35, %v443_v5 }
 0x328   :  { %v474_v49 = vsel %vm229_vm3, %v465_v34, 0.0 }
 0x329   :  { %v420_v50 = vpop.f32.mrf.mxu3  ;;  %v475_v13 = vadd.f32 %v474_v49, %v473_v8 }
 0x32a   :  { %v421_v57 = vadd.f32 %v1876_v52, %v420_v50 }
 0x32c   :  { %v2278_v60 = vmax.f32 %v421_v57, 0.0 }
 0x32e   :  { %v466_v38 = vmul.f32 %v2278_v60, %v2278_v60  ;;  %v446_v6 = vsel %vm229_vm3, %v2278_v60, 0.0 }
 0x32f   :  { %v447_v14 = vadd.f32 %v446_v6, %v445_v9  ;;  %v2340_v6 = vld [vmem:[%s2672_s13 + $0x8] sm:$0xff] }
 0x330   :  { %v476_v10 = vsel %vm229_vm3, %v466_v38, 0.0  ;;  %731 = vmatpush.bf16.msrb.mxu2 %v2340_v6  ;;  %961 = vmatpush.bf16.msrb.mxu3 %v2340_v6 }
 0x331   :  { %v423_v51 = vpop.f32.mrf.mxu3  ;;  %v477_v22 = vadd.f32 %v476_v10, %v475_v13 }
 0x332   :  { %v424_v21 = vadd.f32 %v1876_v52, %v423_v51 }
 0x334   :  { %v2286_v0 = vmax.f32 %v424_v21, 0.0 }
 0x336   :  { %v467_v56 = vmul.f32 %v2286_v0, %v2286_v0  ;;  %v448_v11 = vsel %vm229_vm3, %v2286_v0, 0.0 }
 0x337   :  { %v449_v23 = vadd.f32 %v448_v11, %v447_v14 }
 0x338   :  { %v478_v15 = vsel %vm229_vm3, %v467_v56, 0.0  ;;  %v2354_v56 = vld [vmem:[%s2672_s13] sm:$0xff] }
 0x339   :  { %v425_v19 = vpop.f32.mrf.mxu3  ;;  %v479_v28 = vadd.f32 %v478_v15, %v477_v22  ;;  %732 = vmatpush.bf16.msrb.mxu2 %v2354_v56  ;;  %962 = vmatpush.bf16.msrb.mxu3 %v2354_v56 }
 0x33a   :  { %v426_v61 = vadd.f32 %v1876_v52, %v425_v19 }
 0x33c   :  { %v2295_v43 = vmax.f32 %v426_v61, 0.0 }
 0x33e   :  { %v468_v12 = vmul.f32 %v2295_v43, %v2295_v43  ;;  %v450_v16 = vsel %vm229_vm3, %v2295_v43, 0.0 }
 0x33f   :  { %v451_v29 = vadd.f32 %v450_v16, %v449_v23 }
 0x340   :  { %v480_v25 = vsel %vm229_vm3, %v468_v12, 0.0 }
 0x341   :  { %v428_v31 = vpop.f32.mrf.mxu3  ;;  %v481_v33 = vadd.f32 %v480_v25, %v479_v28 }
 0x342   :  { %v429_v3 = vadd.f32 %v1876_v52, %v428_v31 }
 0x344   :  { %v2303_v7 = vmax.f32 %v429_v3, 0.0 }
 0x346   :  { %v469_v17 = vmul.f32 %v2303_v7, %v2303_v7  ;;  %v452_v26 = vsel %vm229_vm3, %v2303_v7, 0.0 }
 0x347   :  { %v453_v36 = vadd.f32 %v452_v26, %v451_v29 }
 0x348   :  { %v482_v30 = vsel %vm229_vm3, %v469_v17, 0.0  ;;  %v1878_v17 = vld [vmem:[%s2671_s10] ss:$0 sm:$0xff]  ;;  %s2016_s10 = smov 32  }
 0x349   :  { %v430_v24 = vpop.f32.mrf.mxu3  ;;  %v483_v40 = vadd.f32 %v482_v30, %v481_v33 }
 0x34a   :  { %v431_v27 = vadd.f32 %v1876_v52, %v430_v24 }
 0x34c   :  { %v440_v32 = vmax.f32 %v431_v27, 0.0 }
 0x34e   :  { %v454_v37 = vsel %vm229_vm3, %v440_v32, 0.0  ;;  %v470_v39 = vmul.f32 %v440_v32, %v440_v32 }
 0x34f   :  { %v455_v41 = vadd.f32 %v454_v37, %v453_v36 }
 0x350   :  { %v484_v42 = vsel %vm229_vm3, %v470_v39, 0.0 }
 0x351   :  { %v456_v44 = vrot.slane %v455_v41, 4  ;;  %v485_v45 = vadd.f32 %v484_v42, %v483_v40 }
 0x353   :  { %v457_v46 = vadd.f32 %v456_v44, %v455_v41  ;;  %v486_v47 = vrot.slane %v485_v45, 4  ;;  %v1853_v44 = vld [vmem:[%s2673_s11] sm:$0xff] }
 0x355   :  { %v458_v48 = vrot.slane %v457_v46, 2  ;;  %v487_v50 = vadd.f32 %v486_v47, %v485_v45  ;;  %v2017_v45 = vmov 0  }
 0x356   :  { %733 = vmatmul.bf16.vlgmr.msrb.gmra.mxu2 %v2017_v45  ;;  %v698_v45 = vld [vmem:[%s2675_s2 + $0x8] sm:$0xff] }
 0x357   :  { %v459_v51 = vadd.f32 %v458_v48, %v457_v46  ;;  %v488_v52 = vrot.slane %v487_v50, 2 }
 0x359   :  { %v460_v53 = vrot.slane %v459_v51, 1  ;;  %v489_v18 = vadd.f32 %v488_v52, %v487_v50  ;;  %v2392_v52 = vld [vmem:[%s2674_s12] ss:$0 sm:$0xff] }
 0x35b   :  { %v461_v54 = vadd.f32 %v460_v53, %v459_v51  ;;  %v490_v19 = vrot.slane %v489_v18, 1 }
 0x35d   :  { %v2321_v57 = vmul.f32 0.015625, %v461_v54  ;;  %v491_v21 = vadd.f32 %v490_v19, %v489_v18 }
 0x35f   :  { %v492_v61 = vmul.f32 0.015625, %v491_v21  ;;  %v493_v62 = vmul.f32 %v2321_v57, %v2321_v57  ;;  %v503_v63 = vsub.f32 %v440_v32, %v2321_v57  ;;  %v498_v34 = vsub.f32 %v2274_v58, %v2321_v57  ;;  %v1856_v58 = vld [vmem:[%s2673_s11 + $0x18] sm:$0xff] }
 0x360   :  { %v499_v1 = vsub.f32 %v2278_v60, %v2321_v57  ;;  %v500_v2 = vsub.f32 %v2286_v0, %v2321_v57  ;;  %v501_v38 = vsub.f32 %v2295_v43, %v2321_v57  ;;  %v502_v0 = vsub.f32 %v2303_v7, %v2321_v57  ;;  %659 = vmatpush.bf16.msrb.mxu0 %v1856_v58  ;;  %v1855_v43 = vld [vmem:[%s2673_s11 + $0x10] sm:$0xff]  ;;  %v1854_v7 = vld [vmem:[%s2673_s11 + $0x8] sm:$0xff]  ;;  %s2018_s11 = smov 64  }
 0x361   :  { %v494_v31 = vsub.f32 %v492_v61, %v493_v62  ;;  %v514_v35 = vmul.f32 %v1877_v59, %v503_v63  ;;  %v509_v3 = vmul.f32 %v1877_v59, %v498_v34  ;;  %v496_v13 = vsub.f32 %v2272_v20, %v2321_v57 }
 0x362   :  { %v510_v4 = vmul.f32 %v1877_v59, %v499_v1  ;;  %v511_v5 = vmul.f32 %v1877_v59, %v500_v2  ;;  %v512_v60 = vmul.f32 %v1877_v59, %v501_v38  ;;  %v513_v8 = vmul.f32 %v1877_v59, %v502_v0 }
 0x363   :  { %v515_v49 = vadd.f32 1e-05, %v494_v31  ;;  %v507_v16 = vmul.f32 %v1877_v59, %v496_v13  ;;  %v497_v24 = vsub.f32 %v2270_v55, %v2321_v57 }
 0x364   :  { %660 = vmatpush.bf16.msrb.mxu0 %v1855_v43 }
 0x365   :  { %1886 = vrsqrt.f32 %v515_v49  ;;  %vm522_vm8 = vweird.f32 %v515_v49  ;;  %v508_v55 = vmul.f32 %v1877_v59, %v497_v24 }
 0x368   :  { %661 = vmatpush.bf16.msrb.mxu0 %v1854_v7 }
 0x36b   :  { %v1887_v9 = vpop.eup %1886 }
 0x36c   :  { %v517_v10 = vmul.f32 %v1887_v9, %v515_v49  ;;  %vm523_vm7 = vweird.f32 %v1887_v9  ;;  %662 = vmatpush.bf16.msrb.mxu0 %v1853_v44 }
 0x36d   :  { %vm524_vm9 = vmor %vm522_vm8, %vm523_vm7 }
 0x36e   :  { %v518_v11 = vmul.f32 %v1887_v9, %v517_v10 }
 0x370   :  { %v519_v12 = vmul.f32 0.5, %v518_v11 }
 0x372   :  { %v520_v14 = vsub.f32 1.5, %v519_v12 }
 0x374   :  { %v521_v15 = vmul.f32 %v1887_v9, %v520_v14 }
 0x376   :  { %v525_v22 = vsel %vm524_vm9, %v1887_v9, %v521_v15 }
 0x377   :  { %v526_v23 = vmul.f32 %v525_v22, %v507_v16  ;;  %v528_v25 = vmul.f32 %v525_v22, %v509_v3  ;;  %v529_v26 = vmul.f32 %v525_v22, %v510_v4  ;;  %v530_v27 = vmul.f32 %v525_v22, %v511_v5 }
 0x378   :  { %v531_v28 = vmul.f32 %v525_v22, %v512_v60  ;;  %v533_v20 = vmul.f32 %v525_v22, %v514_v35  ;;  %v532_v29 = vmul.f32 %v525_v22, %v513_v8  ;;  %v527_v41 = vmul.f32 %v525_v22, %v508_v55 }
 0x379   :  { %v538_v30 = vadd.f32 %v1878_v17, %v526_v23  ;;  %v2369_v32 = vadd.f32 %v1878_v17, %v528_v25  ;;  %v2371_v33 = vadd.f32 %v1878_v17, %v529_v26  ;;  %v2373_v36 = vadd.f32 %v1878_v17, %v530_v27 }
 0x37a   :  { %v2375_v37 = vadd.f32 %v1878_v17, %v531_v28  ;;  %v2377_v39 = vadd.f32 %v1878_v17, %v533_v20  ;;  %v2379_v40 = vadd.f32 %v1878_v17, %v532_v29  ;;  %v539_v42 = vadd.f32 %v1878_v17, %v527_v41 }
 0x37b   :  { %562 = vrot.lane.b32.xlu0 %v538_v30, %s2016_s10 }
 0x383   :  { %564 = vrot.lane.b32.xlu0 %v539_v42, %s2016_s10 }
 0x3d9   :  { %v734_v53 = vpop.f32.mrf.mxu2 }
 0x3e1   :  { %v736_v59 = vpop.f32.mrf.mxu2 }
 0x3ed   :  { %v563_v46 = vpop.permute.xlu0 %562 }
 0x3ee   :  { %587 = vst.msk [vmem:[#allocation2] sm:$0xff] %vm586_vm10, %v563_v46  ;;  %v1862_v46 = vld [vmem:[%s2676_s14 + $0x18] sm:$0xff] }
 0x3ef   :  { %864 = vmatpush.bf16.msrb.mxu1 %v1862_v46  ;;  %1075 = vmatpush.bf16.msra.mxu2 %v1862_v46 }
 0x3f0   :  { %1286 = vmatpush.bf16.msra.mxu3 %v1862_v46 }
 0x3f5   :  { %v565_v47 = vpop.permute.xlu0 %564  ;;  %v595_v48 = vld [vmem:[#allocation2] sm:$0xff] }
 0x3f6   :  { %588 = vst.msk [vmem:[#allocation2 + $0x8] sm:$0xff] %vm586_vm10, %v565_v47 }
 0x3fd   :  { %v596_v50 = vld [vmem:[#allocation2 + $0x8] sm:$0xff] }
 0x3fe   :  { %v603_v51 = vpack.c.bf16 %v596_v50, %v595_v48 }
 0x400   :  { %1767 = vmatmul.msk.bf16.vlgmr.msrb.gmra.mxu0 %vm179_vm2, %v603_v51 }
 0x47d   :  { %v664_v18 = vpop.f32.mrf.mxu0 }
 0x47e   :  { %v665_v54 = vadd.f32 %v2392_v52, %v664_v18 }
 0x480   :  { %v739_v19 = vadd.f32 %v734_v53, %v665_v54 }
 0x482   :  { %1888 = vtanh.f32 %v739_v19  ;;  %v1779_v34 = vmul.f32 -1.442695, %v739_v19 }
 0x485   :  { %v666_v57 = vpop.f32.mrf.mxu0 }
 0x486   :  { %v667_v21 = vadd.f32 %v2392_v52, %v666_v57 }
 0x488   :  { %v1889_v61 = vpop.eup %1888  ;;  %v740_v62 = vadd.f32 %v736_v59, %v667_v21  ;;  %v1860_v59 = vld [vmem:[%s2676_s14 + $0x8] sm:$0xff] }
 0x489   :  { %785 = vrot.lane.b32.xlu1 %v1889_v61, %s2018_s11 }
 0x48a   :  { %1890 = vtanh.f32 %v740_v62  ;;  %v1780_v1 = vmul.f32 -1.442695, %v740_v62  ;;  %v1859_v62 = vld [vmem:[%s2676_s14] sm:$0xff] }
 0x48b   :  { %1892 = vpow2.f32 %v1779_v34 }
 0x48c   :  { %1894 = vpow2.f32 %v1780_v1  ;;  %v2019_v1 = vmov 0.0  }
 0x490   :  { %v1891_v63 = vpop.eup %1890 }
 0x491   :  { %787 = vrot.lane.b32.xlu1 %v1891_v63, %s2018_s11  ;;  %v1893_v2 = vpop.eup %1892 }
 0x492   :  { %v747_v31 = vadd.f32 1.0, %v1893_v2  ;;  %v1895_v35 = vpop.eup %1894 }
 0x493   :  { %v748_v38 = vadd.f32 1.0, %v1895_v35 }
 0x494   :  { %1896 = vrcp.f32 %v747_v31  ;;  %v760_v8 = vand.u32 2147483648, %v747_v31  ;;  %vm754_vm12 = vweird.f32 %v747_v31  ;;  %v758_v7 = vand.u32 2147483647, %v747_v31 }
 0x495   :  { %1898 = vrcp.f32 %v748_v38  ;;  %v775_v16 = vand.u32 2147483648, %v748_v38  ;;  %vm769_vm0 = vweird.f32 %v748_v38  ;;  %v773_v17 = vand.u32 2147483647, %v748_v38 }
 0x496   :  { %v761_v11 = vor.u32 1.1754944e-38, %v760_v8  ;;  %vm759_vm14 = vcmp.eq.f32.partialorder %v758_v7, 8.507059e+37  ;;  %v2455_v8 = vld [vmem:[%s2677_s15] ss:$0 sm:$0xff] }
 0x497   :  { %v776_v23 = vor.u32 1.1754944e-38, %v775_v16  ;;  %vm774_vm4 = vcmp.eq.f32.partialorder %v773_v17, 8.507059e+37 }
 0x49a   :  { %v1897_v3 = vpop.eup %1896 }
 0x49b   :  { %v750_v4 = vmul.f32 %v1897_v3, %v747_v31  ;;  %v1899_v49 = vpop.eup %1898  ;;  %vm755_vm11 = vweird.f32 %v1897_v3 }
 0x49c   :  { %v765_v60 = vmul.f32 %v1899_v49, %v748_v38  ;;  %vm756_vm13 = vmor %vm754_vm12, %vm755_vm11  ;;  %vm770_vm15 = vweird.f32 %v1899_v49 }
 0x49d   :  { %v751_v5 = vsub.f32 1.0, %v750_v4  ;;  %vm771_vm1 = vmor %vm769_vm0, %vm770_vm15 }
 0x49e   :  { %v766_v43 = vsub.f32 1.0, %v765_v60 }
 0x49f   :  { %v752_v58 = vmul.f32 %v1897_v3, %v751_v5 }
 0x4a0   :  { %v767_v10 = vmul.f32 %v1899_v49, %v766_v43 }
 0x4a1   :  { %v753_v0 = vadd.f32 %v1897_v3, %v752_v58 }
 0x4a2   :  { %v768_v15 = vadd.f32 %v1899_v49, %v767_v10 }
 0x4a3   :  { %v757_v9 = vsel %vm756_vm13, %v1897_v3, %v753_v0 }
 0x4a4   :  { %v762_v13 = vsel %vm759_vm14, %v761_v11, %v757_v9  ;;  %v772_v22 = vsel %vm771_vm1, %v1899_v49, %v768_v15 }
 0x4a5   :  { %v777_v24 = vsel %vm774_vm4, %v776_v23, %v772_v22  ;;  %v781_v27 = vmul.f32 0.0, %v762_v13 }
 0x4a6   :  { %v782_v29 = vmul.f32 0.0, %v777_v24 }
 0x4fb   :  { %v786_v12 = vpop.permute.xlu1 %785 }
 0x4fc   :  { %v791_v14 = vmul.f32 %v786_v12, %v762_v13 }
 0x4fe   :  { %795 = vrot.lane.b32.xlu2 %v791_v14, %s2016_s10 }
 0x503   :  { %v788_v25 = vpop.permute.xlu1 %787 }
 0x504   :  { %v792_v26 = vmul.f32 %v788_v25, %v777_v24 }
 0x506   :  { %797 = vrot.lane.b32.xlu2 %v792_v26, %s2016_s10 }
 0x50e   :  { %566 = vrot.lane.b32.xlu2 %v2369_v32, %s2016_s10  ;;  %v697_v32 = vld [vmem:[%s2675_s2] sm:$0xff] }
 0x516   :  { %703 = vrot.lane.b32.xlu2 %v698_v45, %s2018_s11 }
 0x558   :  { %v796_v28 = vpop.permute.xlu2 %795 }
 0x559   :  { %v2402_v20 = vadd.f32 %v796_v28, %v781_v27 }
 0x55b   :  { %1900 = vtanh.f32 %v2402_v20 }
 0x560   :  { %v798_v30 = vpop.permute.xlu2 %797 }
 0x561   :  { %v1901_v55 = vpop.eup %1900  ;;  %v2405_v41 = vadd.f32 %v798_v30, %v782_v29 }
 0x562   :  { %807 = vrot.lane.b32.xlu0 %v1901_v55, %s2018_s11 }
 0x563   :  { %1902 = vtanh.f32 %v2405_v41 }
 0x568   :  { %v567_v42 = vpop.permute.xlu2 %566 }
 0x569   :  { %v1903_v44 = vpop.eup %1902  ;;  %589 = vst.msk [vmem:[#allocation2 + $0x10] sm:$0xff] %vm586_vm10, %v567_v42 }
 0x56a   :  { %809 = vrot.lane.b32.xlu1 %v1903_v44, %s2018_s11  ;;  %568 = vrot.lane.b32.xlu0 %v2371_v33, %s2016_s10  ;;  %v1861_v33 = vld [vmem:[%s2676_s14 + $0x10] sm:$0xff] }
 0x56b   :  { %865 = vmatpush.bf16.msrb.mxu1 %v1861_v33  ;;  %1076 = vmatpush.bf16.msra.mxu2 %v1861_v33 }
 0x56c   :  { %1287 = vmatpush.bf16.msra.mxu3 %v1861_v33 }
 0x56f   :  { %866 = vmatpush.bf16.msrb.mxu1 %v1860_v59  ;;  %1077 = vmatpush.bf16.msra.mxu2 %v1860_v59 }
 0x570   :  { %v597_v54 = vld [vmem:[#allocation2 + $0x10] sm:$0xff]  ;;  %v704_v21 = vpop.permute.xlu2 %703  ;;  %1288 = vmatpush.bf16.msra.mxu3 %v1860_v59 }
 0x571   :  { %709 = vst.msk [vmem:[#allocation3 + $0x8] sm:$0xff] %vm707_vm5, %v704_v21 }
 0x572   :  { %701 = vrot.lane.b32.xlu1 %v697_v32, %s2018_s11 }
 0x573   :  { %867 = vmatpush.bf16.msrb.mxu1 %v1859_v62  ;;  %1078 = vmatpush.bf16.msra.mxu2 %v1859_v62 }
 0x574   :  { %1289 = vmatpush.bf16.msra.mxu3 %v1859_v62 }
 0x577   :  { %1172 = vmatpush.bf16.msra.mxu1 %v2340_v6  ;;  %1383 = vmatpush.bf16.msrb.mxu2 %v2340_v6 }
 0x57b   :  { %1173 = vmatpush.bf16.msra.mxu1 %v2354_v56  ;;  %1384 = vmatpush.bf16.msrb.mxu2 %v2354_v56 }
 0x5d4   :  { %v808_v47 = vpop.permute.xlu0 %807 }
 0x5d5   :  { %v813_v48 = vmul.f32 %v808_v47, %v762_v13 }
 0x5d7   :  { %817 = vrot.lane.b32.xlu0 %v813_v48, %s2016_s10 }
 0x5dc   :  { %v810_v50 = vpop.permute.xlu1 %809  ;;  %v569_v51 = vpop.permute.xlu0 %568 }
 0x5dd   :  { %v814_v53 = vmul.f32 %v810_v50, %v777_v24  ;;  %590 = vst.msk [vmem:[#allocation2 + $0x18] sm:$0xff] %vm586_vm10, %v569_v51 }
 0x5df   :  { %v948_v18 = vpack.c.bf16 %v814_v53, %v813_v48  ;;  %819 = vrot.lane.b32.xlu1 %v814_v53, %s2016_s10 }
 0x5e1   :  { %950 = vrot.lane.b32.xlu2 %v948_v18, %s2016_s10 }
 0x5e4   :  { %v598_v19 = vld [vmem:[#allocation2 + $0x18] sm:$0xff]  ;;  %v702_v61 = vpop.permute.xlu1 %701 }
 0x5e5   :  { %v604_v57 = vpack.c.bf16 %v598_v19, %v597_v54  ;;  %708 = vst.msk [vmem:[#allocation3] sm:$0xff] %vm707_vm5, %v702_v61 }
 0x5e7   :  { %1768 = vmatmul.msk.bf16.gmra.mxu0 %vm179_vm2, %v604_v57 }
 0x63b   :  { %v951_v63 = vpop.permute.xlu2 %950 }
 0x63c   :  { %1800 = vmatmul.msk.bf16.vlgmr.msrb.gmra.mxu3 %vm229_vm3, %v951_v63 }
 0x649   :  { %v818_v34 = vpop.permute.xlu0 %817 }
 0x64a   :  { %823 = vst.msk [vmem:[#allocation3] sm:$0xff] %vm229_vm3, %v818_v34 }
 0x64b   :  { %825 = vst.msk [vmem:[#allocation3] sm:$0xff] %vm586_vm10, %v2019_v1 }
 0x651   :  { %v820_v2 = vpop.permute.xlu1 %819 }
 0x652   :  { %824 = vst.msk [vmem:[#allocation3 + $0x8] sm:$0xff] %vm229_vm3, %v820_v2  ;;  %v827_v6 = vld [vmem:[#allocation3] sm:$0xff] }
 0x653   :  { %826 = vst.msk [vmem:[#allocation3 + $0x8] sm:$0xff] %vm586_vm10, %v2019_v1 }
 0x65a   :  { %v828_v31 = vld [vmem:[#allocation3 + $0x8] sm:$0xff] }
 0x65b   :  { %v829_v35 = vpack.c.bf16 %v828_v31, %v827_v6 }
 0x65d   :  { %1797 = vmatmul.msk.bf16.vlgmr.msrb.gmra.mxu1 %vm179_vm2, %v829_v35 }
 0x65e   :  { %1497 = vmatpush.bf16.msrb.mxu1 %v1862_v46 }
 0x662   :  { %1498 = vmatpush.bf16.msrb.mxu1 %v1861_v33 }
 0x664   :  { %v669_v56 = vpop.f32.mrf.mxu0 }
 0x665   :  { %v670_v38 = vadd.f32 %v2392_v52, %v669_v56 }
 0x666   :  { %1499 = vmatpush.bf16.msrb.mxu1 %v1860_v59 }
 0x66a   :  { %1500 = vmatpush.bf16.msrb.mxu1 %v1859_v62 }
 0x66c   :  { %v671_v5 = vpop.f32.mrf.mxu0 }
 0x66d   :  { %v672_v49 = vadd.f32 %v2392_v52, %v671_v5 }
 0x6bf   :  { %v964_v3 = vpop.f32.mrf.mxu3 }
 0x6c0   :  { %v969_v4 = vadd.f32 %v964_v3, %v670_v38 }
 0x6c2   :  { %1904 = vtanh.f32 %v969_v4  ;;  %v1801_v14 = vmul.f32 -1.442695, %v969_v4 }
 0x6c7   :  { %v966_v58 = vpop.f32.mrf.mxu3 }
 0x6c8   :  { %v1905_v60 = vpop.eup %1904  ;;  %v970_v0 = vadd.f32 %v966_v58, %v672_v49 }
 0x6c9   :  { %1015 = vrot.lane.b32.xlu0 %v1905_v60, %s2018_s11 }
 0x6ca   :  { %1906 = vtanh.f32 %v970_v0  ;;  %v1802_v16 = vmul.f32 -1.442695, %v970_v0 }
 0x6d0   :  { %v1907_v43 = vpop.eup %1906 }
 0x6d1   :  { %1017 = vrot.lane.b32.xlu1 %v1907_v43, %s2018_s11 }
 0x6da   :  { %v869_v7 = vpop.f32.mrf.mxu1 }
 0x6db   :  { %v870_v9 = vadd.f32 %v2455_v8, %v869_v7 }
 0x6dd   :  { %1908 = vtanh.f32 %v870_v9  ;;  %v1798_v15 = vmul.f32 -1.442695, %v870_v9 }
 0x6e2   :  { %v871_v10 = vpop.f32.mrf.mxu1 }
 0x6e3   :  { %v1909_v11 = vpop.eup %1908  ;;  %v872_v12 = vadd.f32 %v2455_v8, %v871_v10 }
 0x6e4   :  { %918 = vrot.lane.b32.xlu2 %v1909_v11, %s2018_s11 }
 0x6e5   :  { %1910 = vtanh.f32 %v872_v12  ;;  %v1799_v46 = vmul.f32 -1.442695, %v872_v12 }
 0x6e6   :  { %1912 = vpow2.f32 %v1801_v14 }
 0x6e7   :  { %1914 = vpow2.f32 %v1798_v15 }
 0x6e8   :  { %1916 = vpow2.f32 %v1802_v16 }
 0x6eb   :  { %v1911_v13 = vpop.eup %1910 }
 0x6ec   :  { %920 = vrot.lane.b32.xlu0 %v1911_v13, %s2018_s11  ;;  %v1913_v17 = vpop.eup %1912 }
 0x6ed   :  { %v1915_v22 = vpop.eup %1914  ;;  %v977_v23 = vadd.f32 1.0, %v1913_v17 }
 0x6ee   :  { %v880_v24 = vadd.f32 1.0, %v1915_v22  ;;  %v1917_v25 = vpop.eup %1916 }
 0x6ef   :  { %1918 = vrcp.f32 %v977_v23  ;;  %v978_v26 = vadd.f32 1.0, %v1917_v25  ;;  %v990_v50 = vand.u32 2147483648, %v977_v23  ;;  %vm984_vm7 = vweird.f32 %v977_v23 }
 0x6f0   :  { %1920 = vrcp.f32 %v880_v24  ;;  %v988_v51 = vand.u32 2147483647, %v977_v23  ;;  %v893_v54 = vand.u32 2147483648, %v880_v24  ;;  %vm887_vm11 = vweird.f32 %v880_v24 }
 0x6f1   :  { %1922 = vrcp.f32 %v978_v26  ;;  %v991_v57 = vor.u32 1.1754944e-38, %v990_v50  ;;  %v891_v21 = vand.u32 2147483647, %v880_v24  ;;  %v1005_v6 = vand.u32 2147483648, %v978_v26 }
 0x6f2   :  { %1924 = vpow2.f32 %v1799_v46  ;;  %vm989_vm12 = vcmp.eq.f32.partialorder %v988_v51, 8.507059e+37  ;;  %v894_v1 = vor.u32 1.1754944e-38, %v893_v54  ;;  %vm999_vm0 = vweird.f32 %v978_v26 }
 0x6f3   :  { %vm892_vm15 = vcmp.eq.f32.partialorder %v891_v21, 8.507059e+37  ;;  %v1003_v38 = vand.u32 2147483647, %v978_v26  ;;  %v1006_v5 = vor.u32 1.1754944e-38, %v1005_v6 }
 0x6f5   :  { %v1919_v27 = vpop.eup %1918  ;;  %vm1004_vm4 = vcmp.eq.f32.partialorder %v1003_v38, 8.507059e+37 }
 0x6f6   :  { %v1921_v28 = vpop.eup %1920  ;;  %v980_v29 = vmul.f32 %v1919_v27, %v977_v23  ;;  %vm985_vm6 = vweird.f32 %v1919_v27 }
 0x6f7   :  { %v883_v30 = vmul.f32 %v1921_v28, %v880_v24  ;;  %v1923_v42 = vpop.eup %1922  ;;  %vm986_vm8 = vmor %vm984_vm7, %vm985_vm6  ;;  %vm888_vm9 = vweird.f32 %v1921_v28 }
 0x6f8   :  { %v981_v55 = vsub.f32 1.0, %v980_v29  ;;  %v995_v45 = vmul.f32 %v1923_v42, %v978_v26  ;;  %vm889_vm13 = vmor %vm887_vm11, %vm888_vm9  ;;  %v1925_v59 = vpop.eup %1924  ;;  %vm1000_vm14 = vweird.f32 %v1923_v42 }
 0x6f9   :  { %v884_v44 = vsub.f32 1.0, %v883_v30  ;;  %v881_v31 = vadd.f32 1.0, %v1925_v59  ;;  %vm1001_vm1 = vmor %vm999_vm0, %vm1000_vm14 }
 0x6fa   :  { %v982_v32 = vmul.f32 %v1919_v27, %v981_v55  ;;  %v996_v48 = vsub.f32 1.0, %v995_v45 }
 0x6fb   :  { %v885_v33 = vmul.f32 %v1921_v28, %v884_v44  ;;  %1926 = vrcp.f32 %v881_v31  ;;  %v908_v11 = vand.u32 2147483648, %v881_v31  ;;  %vm902_vm6 = vweird.f32 %v881_v31 }
 0x6fc   :  { %v983_v47 = vadd.f32 %v1919_v27, %v982_v32  ;;  %v997_v19 = vmul.f32 %v1923_v42, %v996_v48  ;;  %v906_v12 = vand.u32 2147483647, %v881_v31 }
 0x6fd   :  { %v886_v53 = vadd.f32 %v1921_v28, %v885_v33  ;;  %v909_v14 = vor.u32 1.1754944e-38, %v908_v11 }
 0x6fe   :  { %v987_v18 = vsel %vm986_vm8, %v1919_v27, %v983_v47  ;;  %v998_v2 = vadd.f32 %v1923_v42, %v997_v19  ;;  %vm907_vm8 = vcmp.eq.f32.partialorder %v906_v12, 8.507059e+37 }
 0x6ff   :  { %v2461_v61 = vsel %vm989_vm12, %v991_v57, %v987_v18  ;;  %v890_v63 = vsel %vm889_vm13, %v1921_v28, %v886_v53 }
 0x700   :  { %v2464_v56 = vsel %vm892_vm15, %v894_v1, %v890_v63  ;;  %v1002_v4 = vsel %vm1001_vm1, %v1923_v42, %v998_v2  ;;  %v1011_v26 = vmul.f32 %v2461_v61, %v2402_v20 }
 0x701   :  { %v1007_v58 = vsel %vm1004_vm4, %v1006_v5, %v1002_v4  ;;  %v1927_v0 = vpop.eup %1926  ;;  %v914_v29 = vmul.f32 0.0, %v2464_v56 }
 0x702   :  { %v898_v43 = vmul.f32 %v1927_v0, %v881_v31  ;;  %vm903_vm5 = vweird.f32 %v1927_v0  ;;  %v1012_v22 = vmul.f32 %v1007_v58, %v2405_v41 }
 0x703   :  { %vm904_vm7 = vmor %vm902_vm6, %vm903_vm5 }
 0x704   :  { %v899_v7 = vsub.f32 1.0, %v898_v43 }
 0x706   :  { %v900_v9 = vmul.f32 %v1927_v0, %v899_v7 }
 0x708   :  { %v901_v10 = vadd.f32 %v1927_v0, %v900_v9 }
 0x70a   :  { %v905_v13 = vsel %vm904_vm7, %v1927_v0, %v901_v10 }
 0x70b   :  { %v910_v15 = vsel %vm907_vm8, %v909_v14, %v905_v13 }
 0x70c   :  { %v915_v44 = vmul.f32 0.0, %v910_v15 }
 0x73b   :  { %v1016_v62 = vpop.permute.xlu0 %1015 }
 0x73c   :  { %v1021_v34 = vmul.f32 %v1016_v62, %v2461_v61 }
 0x73e   :  { %v919_v35 = vpop.permute.xlu2 %918  ;;  %1025 = vrot.lane.b32.xlu1 %v1021_v34, %s2016_s10 }
 0x73f   :  { %v924_v3 = vmul.f32 %v919_v35, %v2464_v56 }
 0x741   :  { %928 = vrot.lane.b32.xlu0 %v924_v3, %s2016_s10 }
 0x743   :  { %v1018_v49 = vpop.permute.xlu1 %1017 }
 0x744   :  { %v1022_v60 = vmul.f32 %v1018_v49, %v1007_v58 }
 0x746   :  { %1027 = vrot.lane.b32.xlu2 %v1022_v60, %s2016_s10 }
 0x75e   :  { %v921_v16 = vpop.permute.xlu0 %920 }
 0x75f   :  { %v925_v17 = vmul.f32 %v921_v16, %v910_v15 }
 0x761   :  { %930 = vrot.lane.b32.xlu1 %v925_v17, %s2016_s10 }
 0x7a0   :  { %v1028_v23 = vpop.permute.xlu2 %1027 }
 0x7a1   :  { %v2472_v24 = vadd.f32 %v1028_v23, %v1012_v22 }
 0x7a3   :  { %1928 = vtanh.f32 %v2472_v24 }
 0x7a9   :  { %v1929_v25 = vpop.eup %1928 }
 0x7aa   :  { %1039 = vrot.lane.b32.xlu0 %v1929_v25, %s2018_s11 }
 0x7b0   :  { %v1026_v27 = vpop.permute.xlu1 %1025 }
 0x7b1   :  { %v2478_v28 = vadd.f32 %v1026_v27, %v1011_v26 }
 0x7b3   :  { %1930 = vtanh.f32 %v2478_v28  ;;  %v929_v30 = vpop.permute.xlu0 %928 }
 0x7b4   :  { %v2482_v41 = vadd.f32 %v929_v30, %v914_v29 }
 0x7b6   :  { %1932 = vtanh.f32 %v2482_v41 }
 0x7b9   :  { %v1931_v55 = vpop.eup %1930 }
 0x7ba   :  { %1037 = vrot.lane.b32.xlu2 %v1931_v55, %s2018_s11 }
 0x7bc   :  { %v1933_v42 = vpop.eup %1932 }
 0x7bd   :  { %940 = vrot.lane.b32.xlu1 %v1933_v42, %s2018_s11 }
 0x7d3   :  { %v931_v20 = vpop.permute.xlu1 %930 }
 0x7d4   :  { %v2487_v32 = vadd.f32 %v931_v20, %v915_v44 }
 0x7d6   :  { %1934 = vtanh.f32 %v2487_v32 }
 0x7dc   :  { %v1935_v45 = vpop.eup %1934 }
 0x7dd   :  { %942 = vrot.lane.b32.xlu2 %v1935_v45, %s2018_s11 }
 0x814   :  { %v1038_v46 = vpop.permute.xlu2 %1037 }
 0x815   :  { %v1043_v33 = vmul.f32 %v1038_v46, %v2461_v61 }
 0x817   :  { %1047 = vrot.lane.b32.xlu0 %v1043_v33, %s2016_s10 }
 0x81c   :  { %v1040_v47 = vpop.permute.xlu0 %1039 }
 0x81d   :  { %v1044_v48 = vmul.f32 %v1040_v47, %v1007_v58 }
 0x81f   :  { %1049 = vrot.lane.b32.xlu1 %v1044_v48, %s2016_s10  ;;  %v1159_v54 = vpack.c.bf16 %v1044_v48, %v1043_v33 }
 0x827   :  { %570 = vrot.lane.b32.xlu1 %v2373_v36, %s2016_s10 }
 0x82f   :  { %v941_v50 = vpop.permute.xlu1 %940 }
 0x830   :  { %v946_v51 = vmul.f32 %v941_v50, %v2464_v56 }
 0x832   :  { %1057 = vrot.lane.b32.xlu2 %v946_v51, %s2018_s11 }
 0x837   :  { %v943_v53 = vpop.permute.xlu2 %942 }
 0x838   :  { %v947_v18 = vmul.f32 %v943_v53, %v910_v15 }
 0x83a   :  { %1059 = vrot.lane.b32.xlu0 %v947_v18, %s2018_s11  ;;  %572 = vrot.lane.b32.xlu2 %v2375_v37, %s2016_s10 }
 0x842   :  { %1161 = vrot.lane.b32.xlu0 %v1159_v54, %s2016_s10 }
 0x889   :  { %v1048_v19 = vpop.permute.xlu0 %1047 }
 0x88a   :  { %1053 = vst.msk [vmem:[#allocation3] sm:$0xff] %vm229_vm3, %v1048_v19 }
 0x88c   :  { %v1058_v57 = vpop.permute.xlu2 %1057 }
 0x88d   :  { %1063 = vst.msk [vmem:[#allocation3] sm:$0xff] %vm586_vm10, %v1058_v57 }
 0x891   :  { %v1050_v36 = vpop.permute.xlu1 %1049 }
 0x892   :  { %1054 = vst.msk [vmem:[#allocation3 + $0x8] sm:$0xff] %vm229_vm3, %v1050_v36 }
 0x894   :  { %v573_v21 = vpop.permute.xlu2 %572  ;;  %v1065_v1 = vld [vmem:[#allocation3] sm:$0xff] }
 0x895   :  { %592 = vst.msk [vmem:[#allocation2 + $0x28] sm:$0xff] %vm586_vm10, %v573_v21 }
 0x899   :  { %v571_v59 = vpop.permute.xlu1 %570 }
 0x89a   :  { %591 = vst.msk [vmem:[#allocation2 + $0x20] sm:$0xff] %vm586_vm10, %v571_v59 }
 0x89c   :  { %v600_v37 = vld [vmem:[#allocation2 + $0x28] sm:$0xff] }
 0x8a1   :  { %v599_v61 = vld [vmem:[#allocation2 + $0x20] sm:$0xff] }
 0x8a2   :  { %v605_v62 = vpack.c.bf16 %v600_v37, %v599_v61 }
 0x8a4   :  { %1769 = vmatmul.msk.bf16.gmra.mxu0 %vm179_vm2, %v605_v62 }
 0x8ac   :  { %v1060_v63 = vpop.permute.xlu0 %1059 }
 0x8ad   :  { %1064 = vst.msk [vmem:[#allocation3 + $0x8] sm:$0xff] %vm586_vm10, %v1060_v63 }
 0x8b4   :  { %v1162_v34 = vpop.permute.xlu0 %1161  ;;  %v1066_v2 = vld [vmem:[#allocation3 + $0x8] sm:$0xff] }
 0x8b5   :  { %1806 = vmatmul.msk.bf16.vlgmr.msra.gmra.mxu1 %vm229_vm3, %v1162_v34  ;;  %v1067_v6 = vpack.c.bf16 %v1066_v2, %v1065_v1 }
 0x8b7   :  { %1803 = vmatmul.msk.bf16.vlgmr.msra.gmra.mxu2 %vm179_vm2, %v1067_v6 }
 0x921   :  { %v674_v31 = vpop.f32.mrf.mxu0 }
 0x922   :  { %v675_v35 = vadd.f32 %v2392_v52, %v674_v31 }
 0x929   :  { %v676_v3 = vpop.f32.mrf.mxu0 }
 0x92a   :  { %v677_v4 = vadd.f32 %v2392_v52, %v676_v3 }
 0x932   :  { %v1175_v56 = vpop.f32.mrf.mxu1 }
 0x933   :  { %v1180_v38 = vadd.f32 %v1175_v56, %v675_v35 }
 0x935   :  { %1936 = vtanh.f32 %v1180_v38  ;;  %v1807_v15 = vmul.f32 -1.442695, %v1180_v38 }
 0x93a   :  { %v1080_v5 = vpop.f32.mrf.mxu2  ;;  %v1177_v49 = vpop.f32.mrf.mxu1 }
 0x93b   :  { %v1937_v58 = vpop.eup %1936  ;;  %v1081_v60 = vadd.f32 %v2455_v8, %v1080_v5  ;;  %v1181_v0 = vadd.f32 %v1177_v49, %v677_v4 }
 0x93c   :  { %1226 = vrot.lane.b32.xlu1 %v1937_v58, %s2018_s11 }
 0x93d   :  { %1938 = vtanh.f32 %v1081_v60  ;;  %v1808_v12 = vmul.f32 -1.442695, %v1181_v0  ;;  %v1804_v17 = vmul.f32 -1.442695, %v1081_v60 }
 0x93e   :  { %1940 = vtanh.f32 %v1181_v0 }
 0x942   :  { %v1082_v43 = vpop.f32.mrf.mxu2 }
 0x943   :  { %v1939_v7 = vpop.eup %1938  ;;  %v1083_v9 = vadd.f32 %v2455_v8, %v1082_v43 }
 0x944   :  { %v1941_v10 = vpop.eup %1940  ;;  %1129 = vrot.lane.b32.xlu0 %v1939_v7, %s2018_s11 }
 0x945   :  { %1942 = vtanh.f32 %v1083_v9  ;;  %1228 = vrot.lane.b32.xlu2 %v1941_v10, %s2018_s11  ;;  %v1805_v27 = vmul.f32 -1.442695, %v1083_v9 }
 0x946   :  { %1944 = vpow2.f32 %v1808_v12 }
 0x94b   :  { %v1943_v11 = vpop.eup %1942 }
 0x94c   :  { %1131 = vrot.lane.b32.xlu1 %v1943_v11, %s2018_s11  ;;  %v1945_v13 = vpop.eup %1944 }
 0x94d   :  { %v1189_v14 = vadd.f32 1.0, %v1945_v13 }
 0x94f   :  { %1946 = vrcp.f32 %v1189_v14  ;;  %v1216_v20 = vand.u32 2147483648, %v1189_v14  ;;  %vm1210_vm11 = vweird.f32 %v1189_v14  ;;  %v1214_v45 = vand.u32 2147483647, %v1189_v14 }
 0x950   :  { %1948 = vpow2.f32 %v1807_v15 }
 0x951   :  { %1950 = vpow2.f32 %v1804_v17  ;;  %v1217_v48 = vor.u32 1.1754944e-38, %v1216_v20  ;;  %vm1215_vm13 = vcmp.eq.f32.partialorder %v1214_v45, 8.507059e+37 }
 0x955   :  { %v1947_v16 = vpop.eup %1946 }
 0x956   :  { %v1949_v22 = vpop.eup %1948  ;;  %v1206_v23 = vmul.f32 %v1947_v16, %v1189_v14  ;;  %vm1211_vm9 = vweird.f32 %v1947_v16 }
 0x957   :  { %v1188_v25 = vadd.f32 1.0, %v1949_v22  ;;  %v1951_v29 = vpop.eup %1950  ;;  %vm1212_vm12 = vmor %vm1210_vm11, %vm1211_vm9 }
 0x958   :  { %v1207_v26 = vsub.f32 1.0, %v1206_v23  ;;  %v1091_v55 = vadd.f32 1.0, %v1951_v29 }
 0x959   :  { %1952 = vrcp.f32 %v1188_v25  ;;  %v1201_v37 = vand.u32 2147483648, %v1188_v25  ;;  %vm1195_vm15 = vweird.f32 %v1188_v25  ;;  %v1199_v62 = vand.u32 2147483647, %v1188_v25 }
 0x95a   :  { %v1208_v30 = vmul.f32 %v1947_v16, %v1207_v26  ;;  %1954 = vpow2.f32 %v1805_v27  ;;  %v1104_v3 = vand.u32 2147483648, %v1091_v55  ;;  %vm1098_vm5 = vweird.f32 %v1091_v55 }
 0x95b   :  { %1956 = vrcp.f32 %v1091_v55  ;;  %v1202_v2 = vor.u32 1.1754944e-38, %v1201_v37  ;;  %vm1200_vm1 = vcmp.eq.f32.partialorder %v1199_v62, 8.507059e+37  ;;  %v1102_v4 = vand.u32 2147483647, %v1091_v55 }
 0x95c   :  { %v1209_v44 = vadd.f32 %v1947_v16, %v1208_v30  ;;  %v1105_v58 = vor.u32 1.1754944e-38, %v1104_v3 }
 0x95d   :  { %vm1103_vm7 = vcmp.eq.f32.partialorder %v1102_v4, 8.507059e+37 }
 0x95e   :  { %v1213_v47 = vsel %vm1212_vm12, %v1947_v16, %v1209_v44 }
 0x95f   :  { %v1953_v42 = vpop.eup %1952  ;;  %v2519_v53 = vsel %vm1215_vm13, %v1217_v48, %v1213_v47 }
 0x960   :  { %v1955_v46 = vpop.eup %1954  ;;  %v1191_v33 = vmul.f32 %v1953_v42, %v1188_v25  ;;  %vm1196_vm14 = vweird.f32 %v1953_v42  ;;  %v1223_v23 = vmul.f32 %v2519_v53, %v2472_v24 }
 0x961   :  { %v1092_v50 = vadd.f32 1.0, %v1955_v46  ;;  %v1957_v54 = vpop.eup %1956  ;;  %vm1197_vm0 = vmor %vm1195_vm15, %vm1196_vm14 }
 0x962   :  { %v1192_v18 = vsub.f32 1.0, %v1191_v33  ;;  %v1094_v36 = vmul.f32 %v1957_v54, %v1091_v55  ;;  %vm1099_vm4 = vweird.f32 %v1957_v54 }
 0x963   :  { %1958 = vrcp.f32 %v1092_v50  ;;  %vm1100_vm6 = vmor %vm1098_vm5, %vm1099_vm4  ;;  %v1119_v9 = vand.u32 2147483648, %v1092_v50  ;;  %vm1113_vm9 = vweird.f32 %v1092_v50  ;;  %v1117_v10 = vand.u32 2147483647, %v1092_v50 }
 0x964   :  { %v1193_v57 = vmul.f32 %v1953_v42, %v1192_v18  ;;  %v1095_v59 = vsub.f32 1.0, %v1094_v36 }
 0x965   :  { %v1120_v12 = vor.u32 1.1754944e-38, %v1119_v9  ;;  %vm1118_vm12 = vcmp.eq.f32.partialorder %v1117_v10, 8.507059e+37 }
 0x966   :  { %v1194_v21 = vadd.f32 %v1953_v42, %v1193_v57  ;;  %v1096_v34 = vmul.f32 %v1957_v54, %v1095_v59 }
 0x968   :  { %v1198_v63 = vsel %vm1197_vm0, %v1953_v42, %v1194_v21  ;;  %v1097_v56 = vadd.f32 %v1957_v54, %v1096_v34 }
 0x969   :  { %v1959_v61 = vpop.eup %1958  ;;  %v1203_v31 = vsel %vm1200_vm1, %v1202_v2, %v1198_v63 }
 0x96a   :  { %v1109_v1 = vmul.f32 %v1959_v61, %v1092_v50  ;;  %v1101_v5 = vsel %vm1100_vm6, %v1957_v54, %v1097_v56  ;;  %vm1114_vm8 = vweird.f32 %v1959_v61  ;;  %v1222_v16 = vmul.f32 %v1203_v31, %v2478_v28 }
 0x96b   :  { %v1106_v60 = vsel %vm1103_vm7, %v1105_v58, %v1101_v5  ;;  %vm1115_vm11 = vmor %vm1113_vm9, %vm1114_vm8 }
 0x96c   :  { %v1110_v38 = vsub.f32 1.0, %v1109_v1  ;;  %v1125_v24 = vmul.f32 %v1106_v60, %v2482_v41 }
 0x96e   :  { %v1111_v49 = vmul.f32 %v1959_v61, %v1110_v38 }
 0x970   :  { %v1112_v7 = vadd.f32 %v1959_v61, %v1111_v49 }
 0x972   :  { %v1116_v11 = vsel %vm1115_vm11, %v1959_v61, %v1112_v7 }
 0x973   :  { %v1121_v13 = vsel %vm1118_vm12, %v1120_v12, %v1116_v11 }
 0x974   :  { %v1126_v29 = vmul.f32 %v1121_v13, %v2487_v32 }
 0x99f   :  { %v1229_v51 = vpop.permute.xlu2 %1228 }
 0x9a0   :  { %v1233_v19 = vmul.f32 %v1229_v51, %v2519_v53 }
 0x9a2   :  { %1238 = vrot.lane.b32.xlu0 %v1233_v19, %s2016_s10 }
 0x9ae   :  { %v1227_v6 = vpop.permute.xlu1 %1226 }
 0x9af   :  { %v1232_v35 = vmul.f32 %v1227_v6, %v1203_v31 }
 0x9b1   :  { %1236 = vrot.lane.b32.xlu2 %v1232_v35, %s2016_s10 }
 0x9b6   :  { %v1130_v0 = vpop.permute.xlu0 %1129 }
 0x9b7   :  { %v1135_v43 = vmul.f32 %v1130_v0, %v1106_v60 }
 0x9b9   :  { %1139 = vrot.lane.b32.xlu1 %v1135_v43, %s2016_s10 }
 0x9be   :  { %v1132_v14 = vpop.permute.xlu1 %1131 }
 0x9bf   :  { %v1136_v15 = vmul.f32 %v1132_v14, %v1121_v13 }
 0x9c1   :  { %1141 = vrot.lane.b32.xlu2 %v1136_v15, %s2016_s10 }
 0xa0b   :  { %v1237_v17 = vpop.permute.xlu2 %1236 }
 0xa0c   :  { %v2527_v22 = vadd.f32 %v1237_v17, %v1222_v16 }
 0xa0e   :  { %1960 = vtanh.f32 %v2527_v22 }
 0xa14   :  { %v1961_v25 = vpop.eup %1960  ;;  %v1239_v26 = vpop.permute.xlu0 %1238 }
 0xa15   :  { %v2532_v27 = vadd.f32 %v1239_v26, %v1223_v23  ;;  %1248 = vrot.lane.b32.xlu0 %v1961_v25, %s2018_s11 }
 0xa17   :  { %1962 = vtanh.f32 %v2532_v27 }
 0xa1b   :  { %v1142_v30 = vpop.permute.xlu2 %1141 }
 0xa1c   :  { %v2537_v28 = vadd.f32 %v1142_v30, %v1126_v29 }
 0xa1d   :  { %v1963_v55 = vpop.eup %1962 }
 0xa1e   :  { %1964 = vtanh.f32 %v2537_v28  ;;  %1250 = vrot.lane.b32.xlu1 %v1963_v55, %s2018_s11 }
 0xa24   :  { %v1965_v42 = vpop.eup %1964 }
 0xa25   :  { %1153 = vrot.lane.b32.xlu0 %v1965_v42, %s2018_s11 }
 0xa2b   :  { %v1140_v44 = vpop.permute.xlu1 %1139 }
 0xa2c   :  { %v2543_v20 = vadd.f32 %v1140_v44, %v1125_v24 }
 0xa2e   :  { %1966 = vtanh.f32 %v2543_v20 }
 0xa34   :  { %v1967_v45 = vpop.eup %1966 }
 0xa35   :  { %1151 = vrot.lane.b32.xlu2 %v1967_v45, %s2018_s11 }
 0xa87   :  { %v1249_v32 = vpop.permute.xlu0 %1248 }
 0xa88   :  { %v1254_v46 = vmul.f32 %v1249_v32, %v1203_v31 }
 0xa8a   :  { %1258 = vrot.lane.b32.xlu1 %v1254_v46, %s2016_s10 }
 0xa8f   :  { %v1152_v33 = vpop.permute.xlu2 %1151 }
 0xa90   :  { %v1157_v47 = vmul.f32 %v1152_v33, %v1106_v60  ;;  %v1251_v48 = vpop.permute.xlu1 %1250 }
 0xa91   :  { %v1255_v50 = vmul.f32 %v1251_v48, %v2519_v53 }
 0xa92   :  { %1268 = vrot.lane.b32.xlu0 %v1157_v47, %s2018_s11 }
 0xa93   :  { %1260 = vrot.lane.b32.xlu2 %v1255_v50, %s2016_s10  ;;  %v1370_v18 = vpack.c.bf16 %v1255_v50, %v1254_v46 }
 0xa97   :  { %v1154_v41 = vpop.permute.xlu0 %1153 }
 0xa98   :  { %v1158_v51 = vmul.f32 %v1154_v41, %v1121_v13 }
 0xa9a   :  { %576 = vrot.lane.b32.xlu0 %v2377_v39, %s2016_s10  ;;  %1270 = vrot.lane.b32.xlu1 %v1158_v51, %s2018_s11 }
 0xa9b   :  { %574 = vrot.lane.b32.xlu2 %v2379_v40, %s2016_s10 }
 0xaa2   :  { %1372 = vrot.lane.b32.xlu1 %v1370_v18, %s2016_s10 }
 0xaed   :  { %v1261_v54 = vpop.permute.xlu2 %1260 }
 0xaee   :  { %1265 = vst.msk [vmem:[#allocation3 + $0x8] sm:$0xff] %vm229_vm3, %v1261_v54 }
 0xaf5   :  { %v575_v53 = vpop.permute.xlu2 %574 }
 0xaf6   :  { %593 = vst.msk [vmem:[#allocation2 + $0x30] sm:$0xff] %vm586_vm10, %v575_v53 }
 0xafc   :  { %v1259_v19 = vpop.permute.xlu1 %1258 }
 0xafd   :  { %1264 = vst.msk [vmem:[#allocation3] sm:$0xff] %vm229_vm3, %v1259_v19  ;;  %v601_v61 = vld [vmem:[#allocation2 + $0x30] sm:$0xff] }
 0xb04   :  { %v1269_v57 = vpop.permute.xlu0 %1268 }
 0xb05   :  { %1274 = vst.msk [vmem:[#allocation3] sm:$0xff] %vm586_vm10, %v1269_v57 }
 0xb0c   :  { %v1271_v39 = vpop.permute.xlu1 %1270  ;;  %v577_v36 = vpop.permute.xlu0 %576  ;;  %v1276_v21 = vld [vmem:[#allocation3] sm:$0xff] }
 0xb0d   :  { %1275 = vst.msk [vmem:[#allocation3 + $0x8] sm:$0xff] %vm586_vm10, %v1271_v39 }
 0xb0e   :  { %594 = vst.msk [vmem:[#allocation2 + $0x38] sm:$0xff] %vm586_vm10, %v577_v36 }
 0xb14   :  { %v1373_v40 = vpop.permute.xlu1 %1372  ;;  %v1277_v59 = vld [vmem:[#allocation3 + $0x8] sm:$0xff] }
 0xb15   :  { %1812 = vmatmul.msk.bf16.vlgmr.msrb.gmra.mxu2 %vm229_vm3, %v1373_v40  ;;  %v602_v37 = vld [vmem:[#allocation2 + $0x38] sm:$0xff]  ;;  %v1278_v62 = vpack.c.bf16 %v1277_v59, %v1276_v21 }
 0xb16   :  { %v606_v63 = vpack.c.bf16 %v602_v37, %v601_v61 }
 0xb17   :  { %1809 = vmatmul.msk.bf16.vlgmr.msra.gmra.mxu3 %vm179_vm2, %v1278_v62 }
 0xb18   :  { %1770 = vmatmul.msk.bf16.gmra.mxu0 %vm179_vm2, %v606_v63 }
 0xb95   :  { %v679_v34 = vpop.f32.mrf.mxu0 }
 0xb96   :  { %v680_v1 = vadd.f32 %v2392_v52, %v679_v34 }
 0xb98   :  { %v1386_v2 = vpop.f32.mrf.mxu2 }
 0xb99   :  { %v1391_v6 = vadd.f32 %v1386_v2, %v680_v1 }
 0xb9a   :  { %v1291_v31 = vpop.f32.mrf.mxu3 }
 0xb9b   :  { %1968 = vtanh.f32 %v1391_v6  ;;  %v1292_v35 = vadd.f32 %v2455_v8, %v1291_v31 }
 0xb9d   :  { %v681_v56 = vpop.f32.mrf.mxu0  ;;  %1970 = vtanh.f32 %v1292_v35  ;;  %v1810_v13 = vmul.f32 -1.442695, %v1292_v35 }
 0xb9e   :  { %v682_v38 = vadd.f32 %v2392_v52, %v681_v56  ;;  %v1813_v52 = vmul.f32 -1.442695, %v1391_v6 }
 0xba0   :  { %v1388_v3 = vpop.f32.mrf.mxu2 }
 0xba1   :  { %v1969_v4 = vpop.eup %1968  ;;  %v1392_v5 = vadd.f32 %v1388_v3, %v682_v38 }
 0xba2   :  { %v1293_v49 = vpop.f32.mrf.mxu3  ;;  %1437 = vrot.lane.b32.xlu2 %v1969_v4, %s2018_s11 }
 0xba3   :  { %1972 = vtanh.f32 %v1392_v5  ;;  %v1971_v58 = vpop.eup %1970  ;;  %v1294_v60 = vadd.f32 %v2455_v8, %v1293_v49  ;;  %v1814_v17 = vmul.f32 -1.442695, %v1392_v5 }
 0xba4   :  { %1340 = vrot.lane.b32.xlu1 %v1971_v58, %s2018_s11 }
 0xba5   :  { %1974 = vtanh.f32 %v1294_v60  ;;  %v1811_v10 = vmul.f32 -1.442695, %v1294_v60 }
 0xba6   :  { %1976 = vpow2.f32 %v1813_v52 }
 0xba9   :  { %v1973_v0 = vpop.eup %1972 }
 0xbaa   :  { %1439 = vrot.lane.b32.xlu0 %v1973_v0, %s2018_s11 }
 0xbab   :  { %v1975_v43 = vpop.eup %1974 }
 0xbac   :  { %1342 = vrot.lane.b32.xlu2 %v1975_v43, %s2018_s11  ;;  %v1977_v7 = vpop.eup %1976 }
 0xbad   :  { %v1399_v9 = vadd.f32 1.0, %v1977_v7 }
 0xbaf   :  { %1978 = vrcp.f32 %v1399_v9  ;;  %v1412_v30 = vand.u32 2147483648, %v1399_v9  ;;  %vm1406_vm14 = vweird.f32 %v1399_v9  ;;  %v1410_v42 = vand.u32 2147483647, %v1399_v9 }
 0xbb0   :  { %1980 = vpow2.f32 %v1811_v10 }
 0xbb1   :  { %1982 = vpow2.f32 %v1810_v13  ;;  %v1413_v32 = vor.u32 1.1754944e-38, %v1412_v30  ;;  %vm1411_vm0 = vcmp.eq.f32.partialorder %v1410_v42, 8.507059e+37 }
 0xbb5   :  { %v1979_v11 = vpop.eup %1978 }
 0xbb6   :  { %v1981_v12 = vpop.eup %1980  ;;  %v1402_v14 = vmul.f32 %v1979_v11, %v1399_v9  ;;  %vm1407_vm13 = vweird.f32 %v1979_v11 }
 0xbb7   :  { %v1303_v15 = vadd.f32 1.0, %v1981_v12  ;;  %v1983_v25 = vpop.eup %1982  ;;  %vm1408_vm15 = vmor %vm1406_vm14, %vm1407_vm13 }
 0xbb8   :  { %v1403_v16 = vsub.f32 1.0, %v1402_v14  ;;  %v1302_v55 = vadd.f32 1.0, %v1983_v25 }
 0xbb9   :  { %1984 = vrcp.f32 %v1303_v15  ;;  %v1330_v54 = vand.u32 2147483648, %v1303_v15  ;;  %vm1324_vm4 = vweird.f32 %v1303_v15  ;;  %v1328_v19 = vand.u32 2147483647, %v1303_v15 }
 0xbba   :  { %v1404_v23 = vmul.f32 %v1979_v11, %v1403_v16  ;;  %1986 = vpow2.f32 %v1814_v17  ;;  %v1315_v1 = vand.u32 2147483648, %v1302_v55  ;;  %vm1309_vm8 = vweird.f32 %v1302_v55 }
 0xbbb   :  { %1988 = vrcp.f32 %v1302_v55  ;;  %v1331_v36 = vor.u32 1.1754944e-38, %v1330_v54  ;;  %vm1329_vm6 = vcmp.eq.f32.partialorder %v1328_v19, 8.507059e+37  ;;  %v1313_v6 = vand.u32 2147483647, %v1302_v55 }
 0xbbc   :  { %v1405_v29 = vadd.f32 %v1979_v11, %v1404_v23  ;;  %v1316_v35 = vor.u32 1.1754944e-38, %v1315_v1 }
 0xbbd   :  { %vm1314_vm12 = vcmp.eq.f32.partialorder %v1313_v6, 8.507059e+37 }
 0xbbe   :  { %v1409_v45 = vsel %vm1408_vm15, %v1979_v11, %v1405_v29 }
 0xbbf   :  { %v1985_v26 = vpop.eup %1984  ;;  %v2574_v48 = vsel %vm1411_vm0, %v1413_v32, %v1409_v45 }
 0xbc0   :  { %v1320_v24 = vmul.f32 %v1985_v26, %v1303_v15  ;;  %v1987_v44 = vpop.eup %1986  ;;  %vm1325_vm1 = vweird.f32 %v1985_v26  ;;  %v1433_v7 = vmul.f32 %v2574_v48, %v2527_v22 }
 0xbc1   :  { %v1400_v33 = vadd.f32 1.0, %v1987_v44  ;;  %v1989_v51 = vpop.eup %1988  ;;  %vm1326_vm5 = vmor %vm1324_vm4, %vm1325_vm1 }
 0xbc2   :  { %v1321_v46 = vsub.f32 1.0, %v1320_v24  ;;  %v1305_v53 = vmul.f32 %v1989_v51, %v1302_v55  ;;  %vm1310_vm7 = vweird.f32 %v1989_v51 }
 0xbc3   :  { %1990 = vrcp.f32 %v1400_v33  ;;  %vm1311_vm9 = vmor %vm1309_vm8, %vm1310_vm7  ;;  %v1427_v38 = vand.u32 2147483648, %v1400_v33  ;;  %vm1421_vm13 = vweird.f32 %v1400_v33  ;;  %v1425_v5 = vand.u32 2147483647, %v1400_v33 }
 0xbc4   :  { %v1322_v41 = vmul.f32 %v1985_v26, %v1321_v46  ;;  %v1306_v40 = vsub.f32 1.0, %v1305_v53 }
 0xbc5   :  { %v1428_v60 = vor.u32 1.1754944e-38, %v1427_v38  ;;  %vm1426_vm15 = vcmp.eq.f32.partialorder %v1425_v5, 8.507059e+37 }
 0xbc6   :  { %v1323_v18 = vadd.f32 %v1985_v26, %v1322_v41  ;;  %v1307_v62 = vmul.f32 %v1989_v51, %v1306_v40 }
 0xbc8   :  { %v1327_v39 = vsel %vm1326_vm5, %v1985_v26, %v1323_v18  ;;  %v1308_v34 = vadd.f32 %v1989_v51, %v1307_v62 }
 0xbc9   :  { %v1991_v57 = vpop.eup %1990  ;;  %v2578_v59 = vsel %vm1329_vm6, %v1331_v36, %v1327_v39 }
 0xbca   :  { %v1417_v21 = vmul.f32 %v1991_v57, %v1400_v33  ;;  %v1312_v31 = vsel %vm1311_vm9, %v1989_v51, %v1308_v34  ;;  %vm1422_vm11 = vweird.f32 %v1991_v57  ;;  %v1337_v16 = vmul.f32 %v2578_v59, %v2537_v28 }
 0xbcb   :  { %v1317_v4 = vsel %vm1314_vm12, %v1316_v35, %v1312_v31  ;;  %vm1423_vm14 = vmor %vm1421_vm13, %vm1422_vm11  ;;  %vm1648_vm9 = vcmask 785408  }
 0xbcc   :  { %v1418_v63 = vsub.f32 1.0, %v1417_v21  ;;  %v1336_v11 = vmul.f32 %v1317_v4, %v2543_v20 }
 0xbce   :  { %v1419_v2 = vmul.f32 %v1991_v57, %v1418_v63 }
 0xbd0   :  { %v1420_v56 = vadd.f32 %v1991_v57, %v1419_v2 }
 0xbd2   :  { %v1424_v58 = vsel %vm1423_vm14, %v1991_v57, %v1420_v56 }
 0xbd3   :  { %v1429_v43 = vsel %vm1426_vm15, %v1428_v60, %v1424_v58 }
 0xbd4   :  { %v1434_v23 = vmul.f32 %v1429_v43, %v2532_v27 }
 0xbfc   :  { %v1438_v47 = vpop.permute.xlu2 %1437 }
 0xbfd   :  { %v1443_v50 = vmul.f32 %v1438_v47, %v2574_v48 }
 0xbff   :  { %1447 = vrot.lane.b32.xlu0 %v1443_v50, %s2016_s10 }
 0xc06   :  { %v1343_v61 = vpop.permute.xlu2 %1342 }
 0xc07   :  { %v1347_v37 = vmul.f32 %v1343_v61, %v2578_v59 }
 0xc09   :  { %1352 = vrot.lane.b32.xlu0 %v1347_v37, %s2016_s10 }
 0xc16   :  { %v1341_v3 = vpop.permute.xlu1 %1340 }
 0xc17   :  { %v1346_v49 = vmul.f32 %v1341_v3, %v1317_v4 }
 0xc19   :  { %1350 = vrot.lane.b32.xlu2 %v1346_v49, %s2016_s10 }
 0xc1c   :  { %v1440_v0 = vpop.permute.xlu0 %1439 }
 0xc1d   :  { %v1444_v52 = vmul.f32 %v1440_v0, %v1429_v43 }
 0xc1f   :  { %1449 = vrot.lane.b32.xlu1 %v1444_v52, %s2016_s10 }
 0xc71   :  { %v1448_v9 = vpop.permute.xlu0 %1447 }
 0xc72   :  { %v1453_v10 = vadd.f32 %v1448_v9, %v1433_v7 }
 0xc73   :  { %v1351_v12 = vpop.permute.xlu2 %1350 }
 0xc74   :  { %1992 = vtanh.f32 %v1453_v10  ;;  %v2587_v13 = vadd.f32 %v1351_v12, %v1336_v11 }
 0xc76   :  { %1994 = vtanh.f32 %v2587_v13 }
 0xc7a   :  { %v1993_v14 = vpop.eup %1992 }
 0xc7b   :  { %1459 = vrot.lane.b32.xlu1 %v1993_v14, %s2018_s11  ;;  %v1353_v22 = vpop.permute.xlu0 %1352 }
 0xc7c   :  { %v1995_v15 = vpop.eup %1994  ;;  %v2594_v17 = vadd.f32 %v1353_v22, %v1337_v16 }
 0xc7d   :  { %1362 = vrot.lane.b32.xlu0 %v1995_v15, %s2018_s11 }
 0xc7e   :  { %1996 = vtanh.f32 %v2594_v17 }
 0xc84   :  { %v1997_v20 = vpop.eup %1996 }
 0xc85   :  { %1364 = vrot.lane.b32.xlu1 %v1997_v20, %s2018_s11 }
 0xc91   :  { %v1450_v25 = vpop.permute.xlu1 %1449 }
 0xc92   :  { %v1454_v26 = vadd.f32 %v1450_v25, %v1434_v23  ;;  %v1868_v25 = vld [vmem:[%s2678_s16 + $0x28] sm:$0xff] }
 0xc93   :  { %1654 = vmatpush.bf16.msrb.mxu3 %v1868_v25 }
 0xc94   :  { %1998 = vtanh.f32 %v1454_v26 }
 0xc9a   :  { %v1999_v29 = vpop.eup %1998 }
 0xc9b   :  { %1461 = vrot.lane.b32.xlu2 %v1999_v29, %s2018_s11 }
 0xced   :  { %v1460_v30 = vpop.permute.xlu1 %1459 }
 0xcee   :  { %v1465_v28 = vmul.f32 %v1460_v30, %v2574_v48 }
 0xcef   :  { %v1363_v55 = vpop.permute.xlu0 %1362 }
 0xcf0   :  { %1469 = vrot.lane.b32.xlu2 %v1465_v28, %s2016_s10  ;;  %v1368_v42 = vmul.f32 %v1363_v55, %v1317_v4  ;;  %v1866_v28 = vld [vmem:[%s2678_s16 + $0x18] sm:$0xff]  ;;  %v1865_v55 = vld [vmem:[%s2678_s16 + $0x10] sm:$0xff] }
 0xcf2   :  { %1479 = vrot.lane.b32.xlu1 %v1368_v42, %s2018_s11  ;;  %v1864_v42 = vld [vmem:[%s2678_s16 + $0x8] sm:$0xff] }
 0xcf5   :  { %v1462_v24 = vpop.permute.xlu2 %1461 }
 0xcf6   :  { %v1466_v44 = vmul.f32 %v1462_v24, %v1429_v43  ;;  %v1863_v24 = vld [vmem:[%s2678_s16] sm:$0xff] }
 0xcf7   :  { %v1365_v27 = vpop.permute.xlu1 %1364 }
 0xcf8   :  { %1471 = vrot.lane.b32.xlu0 %v1466_v44, %s2016_s10  ;;  %v1369_v45 = vmul.f32 %v1365_v27, %v2578_v59 }
 0xcfa   :  { %1481 = vrot.lane.b32.xlu2 %v1369_v45, %s2018_s11 }
 0xd4a   :  { %v1470_v32 = vpop.permute.xlu2 %1469 }
 0xd4b   :  { %1475 = vst.msk [vmem:[#allocation3] sm:$0xff] %vm229_vm3, %v1470_v32 }
 0xd54   :  { %v1482_v47 = vpop.permute.xlu2 %1481 }
 0xd64   :  { %v1480_v46 = vpop.permute.xlu1 %1479 }
 0xd65   :  { %1485 = vst.msk [vmem:[#allocation3] sm:$0xff] %vm586_vm10, %v1480_v46 }
 0xd6a   :  { %v1472_v33 = vpop.permute.xlu0 %1471 }
 0xd6b   :  { %1476 = vst.msk [vmem:[#allocation3 + $0x8] sm:$0xff] %vm229_vm3, %v1472_v33 }
 0xd6c   :  { %1486 = vst.msk [vmem:[#allocation3 + $0x8] sm:$0xff] %vm586_vm10, %v1482_v47  ;;  %v1487_v48 = vld [vmem:[#allocation3] sm:$0xff] }
 0xd6d   :  { %1581 = vst.msk [vmem:[#allocation3] sm:$0xff] %vm229_vm3, %v1470_v32  ;;  %v1881_v47 = vld [vmem:[%s2679_s17] ss:$0 sm:$0xff] }
 0xd73   :  { %v1488_v50 = vld [vmem:[#allocation3 + $0x8] sm:$0xff] }
 0xd74   :  { %v1489_v41 = vpack.c.bf16 %v1488_v50, %v1487_v48  ;;  %1582 = vst.msk [vmem:[#allocation3 + $0x8] sm:$0xff] %vm229_vm3, %v1472_v33  ;;  %v25_v33 = vstv %s2681_s19 }
 0xd75   :  { %26 = vst [vmem:[#allocation4] sm:$0x1] %v25_v33 }
 0xd76   :  { %1815 = vmatmul.msk.bf16.vlgmr.msrb.gmra.mxu1 %vm179_vm2, %v1489_v41  ;;  %v1882_v41 = vld [vmem:[%s2680_s18] ss:$0 sm:$0xff] }
 0xdf3   :  { %v1502_v51 = vpop.f32.mrf.mxu1 }
 0xdf4   :  { %v1503_v18 = vadd.f32 %v2455_v8, %v1502_v51 }
 0xdf6   :  { %2000 = vtanh.f32 %v1503_v18  ;;  %v1816_v39 = vmul.f32 -1.442695, %v1503_v18 }
 0xdfb   :  { %v1504_v54 = vpop.f32.mrf.mxu1 }
 0xdfc   :  { %v2001_v53 = vpop.eup %2000  ;;  %v1505_v19 = vadd.f32 %v2455_v8, %v1504_v54 }
 0xdfd   :  { %1551 = vrot.lane.b32.xlu0 %v2001_v53, %s2018_s11 }
 0xdfe   :  { %2002 = vtanh.f32 %v1505_v19  ;;  %v1817_v36 = vmul.f32 -1.442695, %v1505_v19 }
 0xdff   :  { %2004 = vpow2.f32 %v1816_v39 }
 0xe00   :  { %2006 = vpow2.f32 %v1817_v36 }
 0xe04   :  { %v2003_v57 = vpop.eup %2002 }
 0xe05   :  { %1553 = vrot.lane.b32.xlu1 %v2003_v57, %s2018_s11  ;;  %v2005_v40 = vpop.eup %2004 }
 0xe06   :  { %v1513_v21 = vadd.f32 1.0, %v2005_v40  ;;  %v2007_v59 = vpop.eup %2006  ;;  %v1883_v40 = vld [vmem:[#allocation4] ss:$0 sm:$0xff] }
 0xe07   :  { %v1514_v61 = vadd.f32 1.0, %v2007_v59 }
 0xe08   :  { %2008 = vrcp.f32 %v1513_v21  ;;  %v1526_v31 = vand.u32 2147483648, %v1513_v21  ;;  %vm1520_vm0 = vweird.f32 %v1513_v21  ;;  %v1524_v35 = vand.u32 2147483647, %v1513_v21 }
 0xe09   :  { %2010 = vrcp.f32 %v1514_v61  ;;  %v1541_v60 = vand.u32 2147483648, %v1514_v61  ;;  %vm1535_vm6 = vweird.f32 %v1514_v61  ;;  %v1539_v0 = vand.u32 2147483647, %v1514_v61 }
 0xe0a   :  { %v1527_v3 = vor.u32 1.1754944e-38, %v1526_v31  ;;  %vm1525_vm4 = vcmp.eq.f32.partialorder %v1524_v35, 8.507059e+37 }
 0xe0b   :  { %v1542_v52 = vor.u32 1.1754944e-38, %v1541_v60  ;;  %vm1540_vm8 = vcmp.eq.f32.partialorder %v1539_v0, 8.507059e+37 }
 0xe0e   :  { %v2009_v37 = vpop.eup %2008 }
 0xe0f   :  { %v1516_v62 = vmul.f32 %v2009_v37, %v1513_v21  ;;  %v2011_v8 = vpop.eup %2010  ;;  %vm1521_vm2 = vweird.f32 %v2009_v37 }
 0xe10   :  { %v1531_v1 = vmul.f32 %v2011_v8, %v1514_v61  ;;  %vm1522_vm1 = vmor %vm1520_vm0, %vm1521_vm2  ;;  %vm1536_vm5 = vweird.f32 %v2011_v8 }
 0xe11   :  { %v1517_v63 = vsub.f32 1.0, %v1516_v62  ;;  %vm1537_vm7 = vmor %vm1535_vm6, %vm1536_vm5 }
 0xe12   :  { %v1532_v6 = vsub.f32 1.0, %v1531_v1 }
 0xe13   :  { %v1518_v34 = vmul.f32 %v2009_v37, %v1517_v63 }
 0xe14   :  { %v1533_v38 = vmul.f32 %v2011_v8, %v1532_v6 }
 0xe15   :  { %v1519_v2 = vadd.f32 %v2009_v37, %v1518_v34 }
 0xe16   :  { %v1534_v58 = vadd.f32 %v2011_v8, %v1533_v38 }
 0xe17   :  { %v1523_v56 = vsel %vm1522_vm1, %v2009_v37, %v1519_v2 }
 0xe18   :  { %v1528_v5 = vsel %vm1525_vm4, %v1527_v3, %v1523_v56  ;;  %v1538_v43 = vsel %vm1537_vm7, %v2011_v8, %v1534_v58 }
 0xe19   :  { %v1543_v9 = vsel %vm1540_vm8, %v1542_v52, %v1538_v43  ;;  %v1547_v11 = vmul.f32 %v1528_v5, %v2587_v13  ;;  %v1867_v13 = vld [vmem:[%s2678_s16 + $0x20] sm:$0xff] }
 0xe1a   :  { %v1548_v16 = vmul.f32 %v1543_v9, %v2594_v17  ;;  %1655 = vmatpush.bf16.msrb.mxu3 %v1867_v13 }
 0xe1e   :  { %1656 = vmatpush.bf16.msrb.mxu3 %v1866_v28 }
 0xe22   :  { %1657 = vmatpush.bf16.msrb.mxu3 %v1865_v55 }
 0xe26   :  { %1658 = vmatpush.bf16.msrb.mxu3 %v1864_v42 }
 0xe2a   :  { %1659 = vmatpush.bf16.msrb.mxu3 %v1863_v24 }
 0xe6f   :  { %v1552_v4 = vpop.permute.xlu0 %1551 }
 0xe70   :  { %v1557_v49 = vmul.f32 %v1552_v4, %v1528_v5 }
 0xe72   :  { %1561 = vrot.lane.b32.xlu2 %v1557_v49, %s2016_s10 }
 0xe77   :  { %v1554_v7 = vpop.permute.xlu1 %1553 }
 0xe78   :  { %v1558_v10 = vmul.f32 %v1554_v7, %v1543_v9 }
 0xe7a   :  { %1563 = vrot.lane.b32.xlu0 %v1558_v10, %s2016_s10 }
 0xecc   :  { %v1562_v12 = vpop.permute.xlu2 %1561 }
 0xecd   :  { %v1567_v14 = vadd.f32 %v1562_v12, %v1547_v11 }
 0xecf   :  { %2012 = vtanh.f32 %v1567_v14 }
 0xed5   :  { %v2013_v15 = vpop.eup %2012 }
 0xed6   :  { %1573 = vrot.lane.b32.xlu1 %v2013_v15, %s2018_s11 }
 0xeec   :  { %v1564_v22 = vpop.permute.xlu0 %1563 }
 0xeed   :  { %v1568_v20 = vadd.f32 %v1564_v22, %v1548_v16 }
 0xeef   :  { %2014 = vtanh.f32 %v1568_v20 }
 0xef5   :  { %v2015_v23 = vpop.eup %2014 }
 0xef6   :  { %1575 = vrot.lane.b32.xlu2 %v2015_v23, %s2018_s11 }
 0xf48   :  { %v1574_v26 = vpop.permute.xlu1 %1573 }
 0xf49   :  { %v1579_v29 = vmul.f32 %v1574_v26, %v1528_v5 }
 0xf4b   :  { %1585 = vrot.lane.b32.xlu0 %v1579_v29, %s2018_s11 }
 0xf50   :  { %v1576_v17 = vpop.permute.xlu2 %1575 }
 0xf51   :  { %v1580_v30 = vmul.f32 %v1576_v17, %v1543_v9 }
 0xf53   :  { %1587 = vrot.lane.b32.xlu1 %v1580_v30, %s2018_s11 }
 0xfbd   :  { %v1586_v44 = vpop.permute.xlu0 %1585 }
 0xfbe   :  { %1591 = vst.msk [vmem:[#allocation3] sm:$0xff] %vm586_vm10, %v1586_v44 }
 0xfc5   :  { %v1588_v27 = vpop.permute.xlu1 %1587  ;;  %v1593_v45 = vld [vmem:[#allocation3] sm:$0xff] }
 0xfc6   :  { %1592 = vst.msk [vmem:[#allocation3 + $0x8] sm:$0xff] %vm586_vm10, %v1588_v27  ;;  %vm1688_vm10 = vcmask 7168  }
 0xfcd   :  { %v1594_v32 = vld [vmem:[#allocation3 + $0x8] sm:$0xff] }
 0xfce   :  { %v1595_v46 = vpack.c.bf16 %v1594_v32, %v1593_v45 }
 0xfd0   :  { %1842 = vmatmul.msk.bf16.vlgmr.msrb.gmra.mxu3 %vm1648_vm9, %v1595_v46 }
0x1053   :  { %v1661_v48 = vpop.f32.mrf.mxu3 }
0x1054   :  { %v1662_v50 = vadd.f32 %v1881_v47, %v1661_v48 }
0x1056   :  { %v1666_v51 = vmax.f32 %v1662_v50, 0.0 }
0x1058   :  { %v1672_v18 = vmul.f32 %v1882_v41, %v1666_v51 }
0x105a   :  { %v1674_v54 = vsel %vm229_vm3, %v1672_v18, 0.0 }
0x105b   :  { %v1663_v53 = vpop.f32.mrf.mxu3  ;;  %1675 = vadd.xlane.f32.xlu2 %v1674_v54 }
0x105c   :  { %v1664_v19 = vadd.f32 %v1881_v47, %v1663_v53 }
0x105e   :  { %v1667_v57 = vmax.f32 %v1664_v19, 0.0 }
0x1060   :  { %v1673_v39 = vmul.f32 %v1882_v41, %v1667_v57 }
0x1062   :  { %v1677_v36 = vsel %vm229_vm3, %v1673_v39, 0.0 }
0x1063   :  { %1678 = vadd.xlane.f32.xlu0 %v1677_v36 }
0x10ce   :  { %v1676_v21 = vpop.xlane.xlu2 %1675 }
0x10cf   :  { %v1684_v59 = vadd.f32 %v1883_v40, %v1676_v21 }
0x10d1   :  { %v1686_v61 = vmax.f32 %v1684_v59, 0.0 }
0x10d3   :  { %1689 = vst.msk [vmem:[%s2682_s20] sm:$0xff] %vm1688_vm10, %v1686_v61 }
0x10d6   :  { %v1679_v37 = vpop.xlane.xlu0 %1678 }
0x10d7   :  { %v1685_v62 = vadd.f32 %v1883_v40, %v1679_v37 }
0x10d9   :  { %v1687_v63 = vmax.f32 %v1685_v62, 0.0 }
0x10db   :  { %1690 = vst.msk [vmem:[%s2682_s20 + $0x8] sm:$0xff] %vm1688_vm10, %v1687_v63 }

</bundles_post_ra>
